<compile_context>
chip_gen: v7x
topology: tpu7x:2x2x1
jax: 0.10.0
libtpu: 0.0.40
codegen_flags: <defaults>
</compile_context>

<pallas_src>
import functools

import jax
import jax.numpy as jnp
from jax import lax
from jax.experimental import pallas as pl
from jax.experimental.pallas import tpu as pltpu

NUM_HEADS = 14
N_FULL = 196                       # 14 * 14
HEAD_DIM = N_FULL // NUM_HEADS     # 14
QKV_W = 3 * N_FULL                 # 588 fused qkv output columns
SCALE = HEAD_DIM ** (-0.5)


def _channel_attn_kernel(x_ref, wqkv_ref, wp_ref, bp_ref, o_ref, qkv_ref, *,
                         channels):
    """One grid step = Bb batch elements packed as (Bb*C, L) rows.

    x_ref   : (Bb*C, L)    channel-major activation rows (native width L)
    wqkv_ref: (L, 588)     fused qkv weight, head-major cols [q_h|k_h|v_h],
                           q columns pre-scaled by head_dim**-0.5
    wp_ref  : (14, 14, L)  per-head output-projection weight
    bp_ref  : (1, L)       output-projection bias
    o_ref   : (Bb*C, L)
    qkv_ref : (Bb*C, 588)  VMEM scratch for the fused qkv result
    """
    C = channels
    rows, L = x_ref.shape
    bb = rows // C

    # (1) One fused qkv projection for the whole block (M = Bb*C, K = L,
    #     N = 588).  Parked in VMEM scratch; re-sliced below so nothing large
    #     stays live across the unrolled head loop.
    qkv_ref[...] = jnp.dot(x_ref[...], wqkv_ref[...],
                           preferred_element_type=jnp.float32)

    # Hoisted out of the loops (JAX does not CSE broadcast_in_dim).
    bias_rows = jnp.broadcast_to(bp_ref[...], (C, L))

    @pl.loop(0, bb)
    def _(b):
        row = b * C
        if C % 8 == 0:                        # trace-time check
            row = pl.multiple_of(row, 8)      # aligned sublane slices

        # Seed the fused output projection with the bias, then accumulate each
        # head's contribution directly into the output VMEM block.
        o_ref[pl.ds(row, C), :] = bias_rows

        for h in range(NUM_HEADS):            # static unroll, tiny per-head tiles
            base = 3 * HEAD_DIM * h
            # Head-major packing -> ONE contiguous 42-lane load per head.
            qkv_h = qkv_ref[pl.ds(row, C), base:base + 3 * HEAD_DIM]  # (C, 42)
            qh = qkv_h[:, :HEAD_DIM]                                  # pre-scaled
            kh = qkv_h[:, HEAD_DIM:2 * HEAD_DIM]
            vh = qkv_h[:, 2 * HEAD_DIM:]

            # q @ k^T without materializing k.T (contract dim 1 of both).
            s = lax.dot_general(qh, kh, (((1,), (1,)), ((), ())),
                                preferred_element_type=jnp.float32)   # (C, C)
            m = jnp.max(s, axis=-1, keepdims=True)
            p = jnp.exp(s - m)
            # Exact divide (approx reciprocal risks the 1e-4 check); applied
            # AFTER PV so it scales a (C,14) tile, not the (C,C) score tile.
            inv = 1.0 / jnp.sum(p, axis=-1, keepdims=True)
            hv = jnp.dot(p, vh, preferred_element_type=jnp.float32) * inv

            o_ref[pl.ds(row, C), :] = (
                o_ref[pl.ds(row, C), :]
                + jnp.dot(hv, wp_ref[h], preferred_element_type=jnp.float32))


def _pick_block_batch(B, C, L):
    """Batch elements per grid step + a matching vmem_limit_bytes.

    Budget ~25% of this chip's VMEM (128 MiB v5e/v6e, 64 MiB v7x) for the
    double-buffered in/out blocks + qkv scratch, and prefer >= 2 (ideally an
    even number of) grid steps so v7x's two TensorCores stay balanced.
    """
    try:
        vmem_cap = int(pltpu.get_tpu_info().vmem_capacity_bytes)
    except Exception:                          # conservative fallback (v7x TC)
        vmem_cap = 64 << 20
    budget = vmem_cap // 4
    per_elem = 4 * (2 * 2 * C * L + C * QKV_W)          # dbl-buf in+out, qkv scratch
    fixed = 2 * 4 * (L * QKV_W + NUM_HEADS * HEAD_DIM * L + L)  # dbl-buf weights
    max_bb = max(1, (budget - fixed) // max(per_elem, 1))

    # Legal block batches: divisors of B whose row block (Bb*C) is 8-aligned
    # (or covers the whole array, which BlockSpec always allows).
    legal = [d for d in range(1, B + 1)
             if B % d == 0 and ((d * C) % 8 == 0 or d == B)]
    fitting = [d for d in legal if d <= max_bb] or [legal[0]]
    even_steps = [d for d in fitting if (B // d) >= 2 and (B // d) % 2 == 0]
    multi_steps = [d for d in fitting if (B // d) >= 2]
    bb = max(even_steps or multi_steps or fitting)
    vmem_limit = int(min(vmem_cap * 3 // 4, 128 << 20))
    return bb, vmem_limit


def channel_attention_core(x2d, wqkv, wp, bias, *, channels):
    """x2d: (B*C, L) channel-major rows -> (B*C, L) via the Pallas kernel."""
    rows, L = x2d.shape
    C = channels
    B = rows // C
    Bb, vmem_limit = _pick_block_batch(B, C, L)
    grid = (B // Bb,)
    kernel = functools.partial(_channel_attn_kernel, channels=C)
    return pl.pallas_call(
        kernel,
        out_shape=jax.ShapeDtypeStruct((rows, L), jnp.float32),
        grid_spec=pltpu.PrefetchScalarGridSpec(
            num_scalar_prefetch=0,
            grid=grid,
            in_specs=[
                pl.BlockSpec((Bb * C, L), lambda i: (i, 0)),
                pl.BlockSpec((L, QKV_W), lambda i: (0, 0)),
                pl.BlockSpec((NUM_HEADS, HEAD_DIM, L), lambda i: (0, 0, 0)),
                pl.BlockSpec((1, L), lambda i: (0, 0)),
            ],
            out_specs=pl.BlockSpec((Bb * C, L), lambda i: (i, 0)),
            scratch_shapes=[pltpu.VMEM((Bb * C, QKV_W), jnp.float32)],
        ),
        compiler_params=pltpu.CompilerParams(
            dimension_semantics=("parallel",),
            vmem_limit_bytes=vmem_limit),
    )(x2d, wqkv, wp, bias)


def channel_attention_forward(x, params):
    """Full module forward. x: (B, N, C), N in {50, 99, 197}."""
    B, N, C = x.shape
    assert N in (50, 99, 197), "N must be 14 * 14 * mask_ratio + 1"
    L = N - 1
    g = N_FULL // L                      # repeat_interleave factor: 1 / 2 / 4

    cls_tokens = x[:, :1, :]
    # TODO(synk): fold this transpose (and the inverse below) into the kernel
    # to save one HBM round trip of the activation slab.
    xt = jnp.swapaxes(x[:, 1:, :], -2, -1).astype(jnp.float32)   # (B, C, L)

    # Fold repeat_interleave into the qkv weight (sum grouped input rows) and
    # the de-interleave averaging into proj weight / bias (mean grouped output
    # columns); weights stay at native width L (no lane padding).
    wqkv = params["wqkv_hm_scaled"]                              # (196, 588)
    wp = params["wproj_heads"]                                   # (14, 14, 196)
    bp = params["b_proj"]                                        # (196,)
    if g > 1:
        wqkv = wqkv.reshape(L, g, QKV_W).sum(axis=1)             # (L, 588)
        wp = wp.reshape(NUM_HEADS, HEAD_DIM, L, g).mean(axis=-1) # (14, 14, L)
        bp = bp.reshape(L, g).mean(axis=-1)                      # (L,)
    bp = bp.reshape(1, L)

    y = channel_attention_core(xt.reshape(B * C, L), wqkv, wp, bp, channels=C)
    y = y.reshape(B, C, L)
    out = jnp.swapaxes(y, -2, -1).astype(x.dtype)                # (B, L, C)
    return jnp.concatenate((cls_tokens, out), axis=1)


def reference_forward(x, params):
    """Pure-JAX reference mirroring the PyTorch code exactly."""
    B, N, C = x.shape
    cls_tokens = x[:, :1, :]
    xt = jnp.swapaxes(x[:, 1:, :], -2, -1)
    if N == 99:
        xt = jnp.repeat(xt, 2, axis=2)
    elif N == 50:
        xt = jnp.repeat(xt, 4, axis=2)

    qkv = xt @ params["w_qkv"].T                                  # (B, C, 588)
    qkv = qkv.reshape(B, C, 3, NUM_HEADS, HEAD_DIM)
    qkv = jnp.transpose(qkv, (2, 0, 3, 1, 4))                     # (3, B, H, C, d)
    q, k, v = qkv[0], qkv[1], qkv[2]
    attn = jnp.einsum("bhcd,bhed->bhce", q, k) * SCALE
    attn = jax.nn.softmax(attn, axis=-1)
    out = jnp.einsum("bhce,bhed->bhcd", attn, v)                  # (B, H, C, d)
    out = jnp.transpose(out, (0, 2, 1, 3)).reshape(B, C, N_FULL)
    out = out @ params["w_proj"].T + params["b_proj"]

    if N == 99:
        out = (out[:, :, 0::2] + out[:, :, 1::2]) / 2.0
    elif N == 50:
        out = (out[:, :, 0::4] + out[:, :, 1::4]
               + out[:, :, 2::4] + out[:, :, 3::4]) / 4.0
    return jnp.concatenate((cls_tokens, jnp.swapaxes(out, -2, -1)), axis=1)


def init_params(key):
    k1, k2, k3 = jax.random.split(key, 3)
    w_qkv = 0.02 * jax.random.normal(k1, (QKV_W, N_FULL), jnp.float32)
    w_proj = 0.02 * jax.random.normal(k2, (N_FULL, N_FULL), jnp.float32)
    b_proj = 0.02 * jax.random.normal(k3, (N_FULL,), jnp.float32)

    # Fused, pre-transposed qkv weight (x @ W.T form), attention scale folded
    # into the q columns, then repacked HEAD-MAJOR: column h*42 + t*14 + d
    # holds (t in {q,k,v}, head h, dim d).
    col_scale = jnp.concatenate([
        jnp.full((N_FULL,), SCALE, jnp.float32),
        jnp.ones((2 * N_FULL,), jnp.float32)])
    wqkv_t = w_qkv.T * col_scale[None, :]                         # (196, 588)
    wqkv_hm = jnp.transpose(
        wqkv_t.reshape(N_FULL, 3, NUM_HEADS, HEAD_DIM),
        (0, 2, 1, 3)).reshape(N_FULL, QKV_W)                      # head-major

    return {
        "w_qkv": w_qkv,                                           # (588, 196)
        "w_proj": w_proj,                                         # (196, 196)
        "b_proj": b_proj,                                         # (196,)
        "wqkv_hm_scaled": wqkv_hm,                                # (196, 588)
        # Output-proj weight pre-split per head for the fused accumulate.
        "wproj_heads": w_proj.T.reshape(NUM_HEADS, HEAD_DIM, N_FULL),
    }


if __name__ == "__main__":
    key = jax.random.PRNGKey(0)
    pkey, xkey = jax.random.split(key)
    params = init_params(pkey)

    fwd = jax.jit(channel_attention_forward)

    B, C = 2, 8
    for N in (50, 99, 197):                 # repeat_interleave 4 / 2 / 1 paths
        x = jax.random.normal(jax.random.fold_in(xkey, N), (B, N, C),
                              jnp.float32)
        out = jax.block_until_ready(fwd(x, params))
        assert out.shape == (B, N, C), out.shape
        ref = jax.block_until_ready(reference_forward(x, params))
        assert jnp.allclose(out, ref, atol=1e-4, rtol=1e-4), \
            (N, float(jnp.max(jnp.abs(out - ref))))

    print("KERNEL_OK")
</pallas_src>

<mosaic_0001>
module attributes {stable_mosaic.version = 11 : i64} {
  func.func @_channel_attn_kernel(%arg0: i32, %arg1: memref<8x49xf32, #tpu.memory_space<vmem>>, %arg2: memref<49x588xf32, #tpu.memory_space<vmem>>, %arg3: memref<14x14x49xf32, #tpu.memory_space<vmem>>, %arg4: memref<1x49xf32, #tpu.memory_space<vmem>>, %arg5: memref<8x49xf32, #tpu.memory_space<vmem>>, %arg6: memref<8x588xf32, #tpu.memory_space<vmem>>) attributes {dimension_semantics = [#tpu.dimension_semantics<parallel>], iteration_bounds = array<i64: 2>, scalar_prefetch = 0 : i64, scratch_operands = 1 : i64, tpu.core_type = #tpu.core_type<tc>, window_params = [{transform_indices = @transform_0, window_bounds = array<i64: 8, 49>}, {pipeline_mode = #tpu.pipeline_mode<synchronous>, transform_indices = @transform_1, window_bounds = array<i64: 49, 588>}, {pipeline_mode = #tpu.pipeline_mode<synchronous>, transform_indices = @transform_2, window_bounds = array<i64: 14, 14, 49>}, {pipeline_mode = #tpu.pipeline_mode<synchronous>, transform_indices = @transform_3, window_bounds = array<i64: 1, 49>}, {transform_indices = @transform_4, window_bounds = array<i64: 8, 49>}]} {
    %c0 = arith.constant 0 : index
    %c0_0 = arith.constant 0 : index
    %0 = vector.load %arg1[%c0, %c0_0] : memref<8x49xf32, #tpu.memory_space<vmem>>, vector<8x49xf32>
    %c0_1 = arith.constant 0 : index
    %c0_2 = arith.constant 0 : index
    %1 = vector.load %arg2[%c0_1, %c0_2] : memref<49x588xf32, #tpu.memory_space<vmem>>, vector<49x588xf32>
    %cst = arith.constant dense<0.000000e+00> : vector<8x588xf32>
    %2 = tpu.matmul %0, %1, %cst {dimension_numbers = #tpu.dot_dimension_numbers<[1], [0], [0], [1], [0, 0, 1, 1], [], []>} : vector<8x49xf32>, vector<49x588xf32>, vector<8x588xf32> -> vector<8x588xf32>
    %c0_3 = arith.constant 0 : index
    %c0_4 = arith.constant 0 : index
    %3 = vector.load %arg6[%c0_3, %c0_4] : memref<8x588xf32, #tpu.memory_space<vmem>>, vector<8x588xf32>
    tpu.vector_store %arg6[%c0_3, %c0_4], %2 {strides = array<i32>} : memref<8x588xf32, #tpu.memory_space<vmem>>, vector<8x588xf32>,
    %c0_5 = arith.constant 0 : index
    %c0_6 = arith.constant 0 : index
    %4 = vector.load %arg4[%c0_5, %c0_6] : memref<1x49xf32, #tpu.memory_space<vmem>>, vector<1x49xf32>
    %5 = vector.shape_cast %4 : vector<1x49xf32> to vector<1x49xf32>
    %6 = vector.broadcast %5 : vector<1x49xf32> to vector<8x49xf32>
    %c0_i32 = arith.constant 0 : i32
    %c1_i32 = arith.constant 1 : i32
    %7 = arith.muli %c0_i32, %c1_i32 : i32
    %c0_i32_7 = arith.constant 0 : i32
    %8 = arith.addi %c0_i32_7, %7 : i32
    %c8_i32 = arith.constant 8 : i32
    %9 = arith.muli %8, %c8_i32 : i32
    %10 = tpu.assume_multiple %9, 8 : i32
    %11 = arith.index_cast %10 : i32 to index
    %c0_8 = arith.constant 0 : index
    %12 = vector.load %arg5[%11, %c0_8] : memref<8x49xf32, #tpu.memory_space<vmem>>, vector<8x49xf32>
    tpu.vector_store %arg5[%11, %c0_8], %6 {strides = array<i32>} : memref<8x49xf32, #tpu.memory_space<vmem>>, vector<8x49xf32>,
    %13 = arith.index_cast %10 : i32 to index
    %c0_9 = arith.constant 0 : index
    %14 = vector.load %arg6[%13, %c0_9] : memref<8x588xf32, #tpu.memory_space<vmem>>, vector<8x42xf32>
    %15 = vector.extract_strided_slice %14 {offsets = [0, 0], sizes = [8, 14], strides = [1, 1]} : vector<8x42xf32> to vector<8x14xf32>
    %16 = vector.extract_strided_slice %14 {offsets = [0, 14], sizes = [8, 14], strides = [1, 1]} : vector<8x42xf32> to vector<8x14xf32>
    %17 = vector.extract_strided_slice %14 {offsets = [0, 28], sizes = [8, 14], strides = [1, 1]} : vector<8x42xf32> to vector<8x14xf32>
    %cst_10 = arith.constant dense<0.000000e+00> : vector<8x8xf32>
    %18 = tpu.matmul %15, %16, %cst_10 {dimension_numbers = #tpu.dot_dimension_numbers<[1], [1], [0], [0], [0, 0, 1, 0], [], []>} : vector<8x14xf32>, vector<8x14xf32>, vector<8x8xf32> -> vector<8x8xf32>
    %cst_11 = arith.constant dense<0xFF800000> : vector<8xf32>
    %19 = vector.multi_reduction <maximumf>, %18, %cst_11 [1] : vector<8x8xf32> to vector<8xf32>
    %20 = vector.shape_cast %19 : vector<8xf32> to vector<8x1xf32>
    %21 = vector.broadcast %20 : vector<8x1xf32> to vector<8x8xf32>
    %22 = arith.subf %18, %21 : vector<8x8xf32>
    %23 = math.exp %22 : vector<8x8xf32>
    %cst_12 = arith.constant dense<0.000000e+00> : vector<8xf32>
    %24 = vector.multi_reduction <add>, %23, %cst_12 [1] : vector<8x8xf32> to vector<8xf32>
    %25 = vector.shape_cast %24 : vector<8xf32> to vector<8x1xf32>
    %cst_13 = arith.constant 1.000000e+00 : f32
    %26 = vector.broadcast %cst_13 : f32 to vector<8x1xf32>
    %27 = arith.divf %26, %25 : vector<8x1xf32>
    %cst_14 = arith.constant dense<0.000000e+00> : vector<8x14xf32>
    %28 = tpu.matmul %23, %17, %cst_14 {dimension_numbers = #tpu.dot_dimension_numbers<[1], [0], [0], [1], [0, 0, 1, 1], [], []>} : vector<8x8xf32>, vector<8x14xf32>, vector<8x14xf32> -> vector<8x14xf32>
    %29 = vector.broadcast %27 : vector<8x1xf32> to vector<8x14xf32>
    %30 = arith.mulf %28, %29 : vector<8x14xf32>
    %31 = arith.index_cast %10 : i32 to index
    %c0_15 = arith.constant 0 : index
    %32 = vector.load %arg5[%31, %c0_15] : memref<8x49xf32, #tpu.memory_space<vmem>>, vector<8x49xf32>
    %c0_16 = arith.constant 0 : index
    %c0_17 = arith.constant 0 : index
    %c0_18 = arith.constant 0 : index
    %33 = vector.load %arg3[%c0_16, %c0_17, %c0_18] : memref<14x14x49xf32, #tpu.memory_space<vmem>>, vector<1x14x49xf32>
    %34 = vector.shape_cast %33 : vector<1x14x49xf32> to vector<14x49xf32>
    %cst_19 = arith.constant dense<0.000000e+00> : vector<8x49xf32>
    %35 = tpu.matmul %30, %34, %cst_19 {dimension_numbers = #tpu.dot_dimension_numbers<[1], [0], [0], [1], [0, 0, 1, 1], [], []>} : vector<8x14xf32>, vector<14x49xf32>, vector<8x49xf32> -> vector<8x49xf32>
    %36 = arith.addf %32, %35 : vector<8x49xf32>
    %37 = arith.index_cast %10 : i32 to index
    %c0_20 = arith.constant 0 : index
    %38 = vector.load %arg5[%37, %c0_20] : memref<8x49xf32, #tpu.memory_space<vmem>>, vector<8x49xf32>
    tpu.vector_store %arg5[%37, %c0_20], %36 {strides = array<i32>} : memref<8x49xf32, #tpu.memory_space<vmem>>, vector<8x49xf32>,
    %39 = arith.index_cast %10 : i32 to index
    %c42 = arith.constant 42 : index
    %40 = vector.load %arg6[%39, %c42] : memref<8x588xf32, #tpu.memory_space<vmem>>, vector<8x42xf32>
    %41 = vector.extract_strided_slice %40 {offsets = [0, 0], sizes = [8, 14], strides = [1, 1]} : vector<8x42xf32> to vector<8x14xf32>
    %42 = vector.extract_strided_slice %40 {offsets = [0, 14], sizes = [8, 14], strides = [1, 1]} : vector<8x42xf32> to vector<8x14xf32>
    %43 = vector.extract_strided_slice %40 {offsets = [0, 28], sizes = [8, 14], strides = [1, 1]} : vector<8x42xf32> to vector<8x14xf32>
    %cst_21 = arith.constant dense<0.000000e+00> : vector<8x8xf32>
    %44 = tpu.matmul %41, %42, %cst_21 {dimension_numbers = #tpu.dot_dimension_numbers<[1], [1], [0], [0], [0, 0, 1, 0], [], []>} : vector<8x14xf32>, vector<8x14xf32>, vector<8x8xf32> -> vector<8x8xf32>
    %cst_22 = arith.constant dense<0xFF800000> : vector<8xf32>
    %45 = vector.multi_reduction <maximumf>, %44, %cst_22 [1] : vector<8x8xf32> to vector<8xf32>
    %46 = vector.shape_cast %45 : vector<8xf32> to vector<8x1xf32>
    %47 = vector.broadcast %46 : vector<8x1xf32> to vector<8x8xf32>
    %48 = arith.subf %44, %47 : vector<8x8xf32>
    %49 = math.exp %48 : vector<8x8xf32>
    %cst_23 = arith.constant dense<0.000000e+00> : vector<8xf32>
    %50 = vector.multi_reduction <add>, %49, %cst_23 [1] : vector<8x8xf32> to vector<8xf32>
    %51 = vector.shape_cast %50 : vector<8xf32> to vector<8x1xf32>
    %cst_24 = arith.constant 1.000000e+00 : f32
    %52 = vector.broadcast %cst_24 : f32 to vector<8x1xf32>
    %53 = arith.divf %52, %51 : vector<8x1xf32>
    %cst_25 = arith.constant dense<0.000000e+00> : vector<8x14xf32>
    %54 = tpu.matmul %49, %43, %cst_25 {dimension_numbers = #tpu.dot_dimension_numbers<[1], [0], [0], [1], [0, 0, 1, 1], [], []>} : vector<8x8xf32>, vector<8x14xf32>, vector<8x14xf32> -> vector<8x14xf32>
    %55 = vector.broadcast %53 : vector<8x1xf32> to vector<8x14xf32>
    %56 = arith.mulf %54, %55 : vector<8x14xf32>
    %57 = arith.index_cast %10 : i32 to index
    %c0_26 = arith.constant 0 : index
    %58 = vector.load %arg5[%57, %c0_26] : memref<8x49xf32, #tpu.memory_space<vmem>>, vector<8x49xf32>
    %c1 = arith.constant 1 : index
    %c0_27 = arith.constant 0 : index
    %c0_28 = arith.constant 0 : index
    %59 = vector.load %arg3[%c1, %c0_27, %c0_28] : memref<14x14x49xf32, #tpu.memory_space<vmem>>, vector<1x14x49xf32>
    %60 = vector.shape_cast %59 : vector<1x14x49xf32> to vector<14x49xf32>
    %cst_29 = arith.constant dense<0.000000e+00> : vector<8x49xf32>
    %61 = tpu.matmul %56, %60, %cst_29 {dimension_numbers = #tpu.dot_dimension_numbers<[1], [0], [0], [1], [0, 0, 1, 1], [], []>} : vector<8x14xf32>, vector<14x49xf32>, vector<8x49xf32> -> vector<8x49xf32>
    %62 = arith.addf %58, %61 : vector<8x49xf32>
    %63 = arith.index_cast %10 : i32 to index
    %c0_30 = arith.constant 0 : index
    %64 = vector.load %arg5[%63, %c0_30] : memref<8x49xf32, #tpu.memory_space<vmem>>, vector<8x49xf32>
    tpu.vector_store %arg5[%63, %c0_30], %62 {strides = array<i32>} : memref<8x49xf32, #tpu.memory_space<vmem>>, vector<8x49xf32>,
    %65 = arith.index_cast %10 : i32 to index
    %c84 = arith.constant 84 : index
    %66 = vector.load %arg6[%65, %c84] : memref<8x588xf32, #tpu.memory_space<vmem>>, vector<8x42xf32>
    %67 = vector.extract_strided_slice %66 {offsets = [0, 0], sizes = [8, 14], strides = [1, 1]} : vector<8x42xf32> to vector<8x14xf32>
    %68 = vector.extract_strided_slice %66 {offsets = [0, 14], sizes = [8, 14], strides = [1, 1]} : vector<8x42xf32> to vector<8x14xf32>
    %69 = vector.extract_strided_slice %66 {offsets = [0, 28], sizes = [8, 14], strides = [1, 1]} : vector<8x42xf32> to vector<8x14xf32>
    %cst_31 = arith.constant dense<0.000000e+00> : vector<8x8xf32>
    %70 = tpu.matmul %67, %68, %cst_31 {dimension_numbers = #tpu.dot_dimension_numbers<[1], [1], [0], [0], [0, 0, 1, 0], [], []>} : vector<8x14xf32>, vector<8x14xf32>, vector<8x8xf32> -> vector<8x8xf32>
    %cst_32 = arith.constant dense<0xFF800000> : vector<8xf32>
    %71 = vector.multi_reduction <maximumf>, %70, %cst_32 [1] : vector<8x8xf32> to vector<8xf32>
    %72 = vector.shape_cast %71 : vector<8xf32> to vector<8x1xf32>
    %73 = vector.broadcast %72 : vector<8x1xf32> to vector<8x8xf32>
    %74 = arith.subf %70, %73 : vector<8x8xf32>
    %75 = math.exp %74 : vector<8x8xf32>
    %cst_33 = arith.constant dense<0.000000e+00> : vector<8xf32>
    %76 = vector.multi_reduction <add>, %75, %cst_33 [1] : vector<8x8xf32> to vector<8xf32>
    %77 = vector.shape_cast %76 : vector<8xf32> to vector<8x1xf32>
    %cst_34 = arith.constant 1.000000e+00 : f32
    %78 = vector.broadcast %cst_34 : f32 to vector<8x1xf32>
    %79 = arith.divf %78, %77 : vector<8x1xf32>
    %cst_35 = arith.constant dense<0.000000e+00> : vector<8x14xf32>
    %80 = tpu.matmul %75, %69, %cst_35 {dimension_numbers = #tpu.dot_dimension_numbers<[1], [0], [0], [1], [0, 0, 1, 1], [], []>} : vector<8x8xf32>, vector<8x14xf32>, vector<8x14xf32> -> vector<8x14xf32>
    %81 = vector.broadcast %79 : vector<8x1xf32> to vector<8x14xf32>
    %82 = arith.mulf %80, %81 : vector<8x14xf32>
    %83 = arith.index_cast %10 : i32 to index
    %c0_36 = arith.constant 0 : index
    %84 = vector.load %arg5[%83, %c0_36] : memref<8x49xf32, #tpu.memory_space<vmem>>, vector<8x49xf32>
    %c2 = arith.constant 2 : index
    %c0_37 = arith.constant 0 : index
    %c0_38 = arith.constant 0 : index
    %85 = vector.load %arg3[%c2, %c0_37, %c0_38] : memref<14x14x49xf32, #tpu.memory_space<vmem>>, vector<1x14x49xf32>
    %86 = vector.shape_cast %85 : vector<1x14x49xf32> to vector<14x49xf32>
    %cst_39 = arith.constant dense<0.000000e+00> : vector<8x49xf32>
    %87 = tpu.matmul %82, %86, %cst_39 {dimension_numbers = #tpu.dot_dimension_numbers<[1], [0], [0], [1], [0, 0, 1, 1], [], []>} : vector<8x14xf32>, vector<14x49xf32>, vector<8x49xf32> -> vector<8x49xf32>
    %88 = arith.addf %84, %87 : vector<8x49xf32>
    %89 = arith.index_cast %10 : i32 to index
    %c0_40 = arith.constant 0 : index
    %90 = vector.load %arg5[%89, %c0_40] : memref<8x49xf32, #tpu.memory_space<vmem>>, vector<8x49xf32>
    tpu.vector_store %arg5[%89, %c0_40], %88 {strides = array<i32>} : memref<8x49xf32, #tpu.memory_space<vmem>>, vector<8x49xf32>,
    %91 = arith.index_cast %10 : i32 to index
    %c126 = arith.constant 126 : index
    %92 = vector.load %arg6[%91, %c126] : memref<8x588xf32, #tpu.memory_space<vmem>>, vector<8x42xf32>
    %93 = vector.extract_strided_slice %92 {offsets = [0, 0], sizes = [8, 14], strides = [1, 1]} : vector<8x42xf32> to vector<8x14xf32>
    %94 = vector.extract_strided_slice %92 {offsets = [0, 14], sizes = [8, 14], strides = [1, 1]} : vector<8x42xf32> to vector<8x14xf32>
    %95 = vector.extract_strided_slice %92 {offsets = [0, 28], sizes = [8, 14], strides = [1, 1]} : vector<8x42xf32> to vector<8x14xf32>
    %cst_41 = arith.constant dense<0.000000e+00> : vector<8x8xf32>
    %96 = tpu.matmul %93, %94, %cst_41 {dimension_numbers = #tpu.dot_dimension_numbers<[1], [1], [0], [0], [0, 0, 1, 0], [], []>} : vector<8x14xf32>, vector<8x14xf32>, vector<8x8xf32> -> vector<8x8xf32>
    %cst_42 = arith.constant dense<0xFF800000> : vector<8xf32>
    %97 = vector.multi_reduction <maximumf>, %96, %cst_42 [1] : vector<8x8xf32> to vector<8xf32>
    %98 = vector.shape_cast %97 : vector<8xf32> to vector<8x1xf32>
    %99 = vector.broadcast %98 : vector<8x1xf32> to vector<8x8xf32>
    %100 = arith.subf %96, %99 : vector<8x8xf32>
    %101 = math.exp %100 : vector<8x8xf32>
    %cst_43 = arith.constant dense<0.000000e+00> : vector<8xf32>
    %102 = vector.multi_reduction <add>, %101, %cst_43 [1] : vector<8x8xf32> to vector<8xf32>
    %103 = vector.shape_cast %102 : vector<8xf32> to vector<8x1xf32>
    %cst_44 = arith.constant 1.000000e+00 : f32
    %104 = vector.broadcast %cst_44 : f32 to vector<8x1xf32>
    %105 = arith.divf %104, %103 : vector<8x1xf32>
    %cst_45 = arith.constant dense<0.000000e+00> : vector<8x14xf32>
    %106 = tpu.matmul %101, %95, %cst_45 {dimension_numbers = #tpu.dot_dimension_numbers<[1], [0], [0], [1], [0, 0, 1, 1], [], []>} : vector<8x8xf32>, vector<8x14xf32>, vector<8x14xf32> -> vector<8x14xf32>
    %107 = vector.broadcast %105 : vector<8x1xf32> to vector<8x14xf32>
    %108 = arith.mulf %106, %107 : vector<8x14xf32>
    %109 = arith.index_cast %10 : i32 to index
    %c0_46 = arith.constant 0 : index
    %110 = vector.load %arg5[%109, %c0_46] : memref<8x49xf32, #tpu.memory_space<vmem>>, vector<8x49xf32>
    %c3 = arith.constant 3 : index
    %c0_47 = arith.constant 0 : index
    %c0_48 = arith.constant 0 : index
    %111 = vector.load %arg3[%c3, %c0_47, %c0_48] : memref<14x14x49xf32, #tpu.memory_space<vmem>>, vector<1x14x49xf32>
    %112 = vector.shape_cast %111 : vector<1x14x49xf32> to vector<14x49xf32>
    %cst_49 = arith.constant dense<0.000000e+00> : vector<8x49xf32>
    %113 = tpu.matmul %108, %112, %cst_49 {dimension_numbers = #tpu.dot_dimension_numbers<[1], [0], [0], [1], [0, 0, 1, 1], [], []>} : vector<8x14xf32>, vector<14x49xf32>, vector<8x49xf32> -> vector<8x49xf32>
    %114 = arith.addf %110, %113 : vector<8x49xf32>
    %115 = arith.index_cast %10 : i32 to index
    %c0_50 = arith.constant 0 : index
    %116 = vector.load %arg5[%115, %c0_50] : memref<8x49xf32, #tpu.memory_space<vmem>>, vector<8x49xf32>
    tpu.vector_store %arg5[%115, %c0_50], %114 {strides = array<i32>} : memref<8x49xf32, #tpu.memory_space<vmem>>, vector<8x49xf32>,
    %117 = arith.index_cast %10 : i32 to index
    %c168 = arith.constant 168 : index
    %118 = vector.load %arg6[%117, %c168] : memref<8x588xf32, #tpu.memory_space<vmem>>, vector<8x42xf32>
    %119 = vector.extract_strided_slice %118 {offsets = [0, 0], sizes = [8, 14], strides = [1, 1]} : vector<8x42xf32> to vector<8x14xf32>
    %120 = vector.extract_strided_slice %118 {offsets = [0, 14], sizes = [8, 14], strides = [1, 1]} : vector<8x42xf32> to vector<8x14xf32>
    %121 = vector.extract_strided_slice %118 {offsets = [0, 28], sizes = [8, 14], strides = [1, 1]} : vector<8x42xf32> to vector<8x14xf32>
    %cst_51 = arith.constant dense<0.000000e+00> : vector<8x8xf32>
    %122 = tpu.matmul %119, %120, %cst_51 {dimension_numbers = #tpu.dot_dimension_numbers<[1], [1], [0], [0], [0, 0, 1, 0], [], []>} : vector<8x14xf32>, vector<8x14xf32>, vector<8x8xf32> -> vector<8x8xf32>
    %cst_52 = arith.constant dense<0xFF800000> : vector<8xf32>
    %123 = vector.multi_reduction <maximumf>, %122, %cst_52 [1] : vector<8x8xf32> to vector<8xf32>
    %124 = vector.shape_cast %123 : vector<8xf32> to vector<8x1xf32>
    %125 = vector.broadcast %124 : vector<8x1xf32> to vector<8x8xf32>
    %126 = arith.subf %122, %125 : vector<8x8xf32>
    %127 = math.exp %126 : vector<8x8xf32>
    %cst_53 = arith.constant dense<0.000000e+00> : vector<8xf32>
    %128 = vector.multi_reduction <add>, %127, %cst_53 [1] : vector<8x8xf32> to vector<8xf32>
    %129 = vector.shape_cast %128 : vector<8xf32> to vector<8x1xf32>
    %cst_54 = arith.constant 1.000000e+00 : f32
    %130 = vector.broadcast %cst_54 : f32 to vector<8x1xf32>
    %131 = arith.divf %130, %129 : vector<8x1xf32>
    %cst_55 = arith.constant dense<0.000000e+00> : vector<8x14xf32>
    %132 = tpu.matmul %127, %121, %cst_55 {dimension_numbers = #tpu.dot_dimension_numbers<[1], [0], [0], [1], [0, 0, 1, 1], [], []>} : vector<8x8xf32>, vector<8x14xf32>, vector<8x14xf32> -> vector<8x14xf32>
    %133 = vector.broadcast %131 : vector<8x1xf32> to vector<8x14xf32>
    %134 = arith.mulf %132, %133 : vector<8x14xf32>
    %135 = arith.index_cast %10 : i32 to index
    %c0_56 = arith.constant 0 : index
    %136 = vector.load %arg5[%135, %c0_56] : memref<8x49xf32, #tpu.memory_space<vmem>>, vector<8x49xf32>
    %c4 = arith.constant 4 : index
    %c0_57 = arith.constant 0 : index
    %c0_58 = arith.constant 0 : index
    %137 = vector.load %arg3[%c4, %c0_57, %c0_58] : memref<14x14x49xf32, #tpu.memory_space<vmem>>, vector<1x14x49xf32>
    %138 = vector.shape_cast %137 : vector<1x14x49xf32> to vector<14x49xf32>
    %cst_59 = arith.constant dense<0.000000e+00> : vector<8x49xf32>
    %139 = tpu.matmul %134, %138, %cst_59 {dimension_numbers = #tpu.dot_dimension_numbers<[1], [0], [0], [1], [0, 0, 1, 1], [], []>} : vector<8x14xf32>, vector<14x49xf32>, vector<8x49xf32> -> vector<8x49xf32>
    %140 = arith.addf %136, %139 : vector<8x49xf32>
    %141 = arith.index_cast %10 : i32 to index
    %c0_60 = arith.constant 0 : index
    %142 = vector.load %arg5[%141, %c0_60] : memref<8x49xf32, #tpu.memory_space<vmem>>, vector<8x49xf32>
    tpu.vector_store %arg5[%141, %c0_60], %140 {strides = array<i32>} : memref<8x49xf32, #tpu.memory_space<vmem>>, vector<8x49xf32>,
    %143 = arith.index_cast %10 : i32 to index
    %c210 = arith.constant 210 : index
    %144 = vector.load %arg6[%143, %c210] : memref<8x588xf32, #tpu.memory_space<vmem>>, vector<8x42xf32>
    %145 = vector.extract_strided_slice %144 {offsets = [0, 0], sizes = [8, 14], strides = [1, 1]} : vector<8x42xf32> to vector<8x14xf32>
    %146 = vector.extract_strided_slice %144 {offsets = [0, 14], sizes = [8, 14], strides = [1, 1]} : vector<8x42xf32> to vector<8x14xf32>
    %147 = vector.extract_strided_slice %144 {offsets = [0, 28], sizes = [8, 14], strides = [1, 1]} : vector<8x42xf32> to vector<8x14xf32>
    %cst_61 = arith.constant dense<0.000000e+00> : vector<8x8xf32>
    %148 = tpu.matmul %145, %146, %cst_61 {dimension_numbers = #tpu.dot_dimension_numbers<[1], [1], [0], [0], [0, 0, 1, 0], [], []>} : vector<8x14xf32>, vector<8x14xf32>, vector<8x8xf32> -> vector<8x8xf32>
    %cst_62 = arith.constant dense<0xFF800000> : vector<8xf32>
    %149 = vector.multi_reduction <maximumf>, %148, %cst_62 [1] : vector<8x8xf32> to vector<8xf32>
    %150 = vector.shape_cast %149 : vector<8xf32> to vector<8x1xf32>
    %151 = vector.broadcast %150 : vector<8x1xf32> to vector<8x8xf32>
    %152 = arith.subf %148, %151 : vector<8x8xf32>
    %153 = math.exp %152 : vector<8x8xf32>
    %cst_63 = arith.constant dense<0.000000e+00> : vector<8xf32>
    %154 = vector.multi_reduction <add>, %153, %cst_63 [1] : vector<8x8xf32> to vector<8xf32>
    %155 = vector.shape_cast %154 : vector<8xf32> to vector<8x1xf32>
    %cst_64 = arith.constant 1.000000e+00 : f32
    %156 = vector.broadcast %cst_64 : f32 to vector<8x1xf32>
    %157 = arith.divf %156, %155 : vector<8x1xf32>
    %cst_65 = arith.constant dense<0.000000e+00> : vector<8x14xf32>
    %158 = tpu.matmul %153, %147, %cst_65 {dimension_numbers = #tpu.dot_dimension_numbers<[1], [0], [0], [1], [0, 0, 1, 1], [], []>} : vector<8x8xf32>, vector<8x14xf32>, vector<8x14xf32> -> vector<8x14xf32>
    %159 = vector.broadcast %157 : vector<8x1xf32> to vector<8x14xf32>
    %160 = arith.mulf %158, %159 : vector<8x14xf32>
    %161 = arith.index_cast %10 : i32 to index
    %c0_66 = arith.constant 0 : index
    %162 = vector.load %arg5[%161, %c0_66] : memref<8x49xf32, #tpu.memory_space<vmem>>, vector<8x49xf32>
    %c5 = arith.constant 5 : index
    %c0_67 = arith.constant 0 : index
    %c0_68 = arith.constant 0 : index
    %163 = vector.load %arg3[%c5, %c0_67, %c0_68] : memref<14x14x49xf32, #tpu.memory_space<vmem>>, vector<1x14x49xf32>
    %164 = vector.shape_cast %163 : vector<1x14x49xf32> to vector<14x49xf32>
    %cst_69 = arith.constant dense<0.000000e+00> : vector<8x49xf32>
    %165 = tpu.matmul %160, %164, %cst_69 {dimension_numbers = #tpu.dot_dimension_numbers<[1], [0], [0], [1], [0, 0, 1, 1], [], []>} : vector<8x14xf32>, vector<14x49xf32>, vector<8x49xf32> -> vector<8x49xf32>
    %166 = arith.addf %162, %165 : vector<8x49xf32>
    %167 = arith.index_cast %10 : i32 to index
    %c0_70 = arith.constant 0 : index
    %168 = vector.load %arg5[%167, %c0_70] : memref<8x49xf32, #tpu.memory_space<vmem>>, vector<8x49xf32>
    tpu.vector_store %arg5[%167, %c0_70], %166 {strides = array<i32>} : memref<8x49xf32, #tpu.memory_space<vmem>>, vector<8x49xf32>,
    %169 = arith.index_cast %10 : i32 to index
    %c252 = arith.constant 252 : index
    %170 = vector.load %arg6[%169, %c252] : memref<8x588xf32, #tpu.memory_space<vmem>>, vector<8x42xf32>
    %171 = vector.extract_strided_slice %170 {offsets = [0, 0], sizes = [8, 14], strides = [1, 1]} : vector<8x42xf32> to vector<8x14xf32>
    %172 = vector.extract_strided_slice %170 {offsets = [0, 14], sizes = [8, 14], strides = [1, 1]} : vector<8x42xf32> to vector<8x14xf32>
    %173 = vector.extract_strided_slice %170 {offsets = [0, 28], sizes = [8, 14], strides = [1, 1]} : vector<8x42xf32> to vector<8x14xf32>
    %cst_71 = arith.constant dense<0.000000e+00> : vector<8x8xf32>
    %174 = tpu.matmul %171, %172, %cst_71 {dimension_numbers = #tpu.dot_dimension_numbers<[1], [1], [0], [0], [0, 0, 1, 0], [], []>} : vector<8x14xf32>, vector<8x14xf32>, vector<8x8xf32> -> vector<8x8xf32>
    %cst_72 = arith.constant dense<0xFF800000> : vector<8xf32>
    %175 = vector.multi_reduction <maximumf>, %174, %cst_72 [1] : vector<8x8xf32> to vector<8xf32>
    %176 = vector.shape_cast %175 : vector<8xf32> to vector<8x1xf32>
    %177 = vector.broadcast %176 : vector<8x1xf32> to vector<8x8xf32>
    %178 = arith.subf %174, %177 : vector<8x8xf32>
    %179 = math.exp %178 : vector<8x8xf32>
    %cst_73 = arith.constant dense<0.000000e+00> : vector<8xf32>
    %180 = vector.multi_reduction <add>, %179, %cst_73 [1] : vector<8x8xf32> to vector<8xf32>
    %181 = vector.shape_cast %180 : vector<8xf32> to vector<8x1xf32>
    %cst_74 = arith.constant 1.000000e+00 : f32
    %182 = vector.broadcast %cst_74 : f32 to vector<8x1xf32>
    %183 = arith.divf %182, %181 : vector<8x1xf32>
    %cst_75 = arith.constant dense<0.000000e+00> : vector<8x14xf32>
    %184 = tpu.matmul %179, %173, %cst_75 {dimension_numbers = #tpu.dot_dimension_numbers<[1], [0], [0], [1], [0, 0, 1, 1], [], []>} : vector<8x8xf32>, vector<8x14xf32>, vector<8x14xf32> -> vector<8x14xf32>
    %185 = vector.broadcast %183 : vector<8x1xf32> to vector<8x14xf32>
    %186 = arith.mulf %184, %185 : vector<8x14xf32>
    %187 = arith.index_cast %10 : i32 to index
    %c0_76 = arith.constant 0 : index
    %188 = vector.load %arg5[%187, %c0_76] : memref<8x49xf32, #tpu.memory_space<vmem>>, vector<8x49xf32>
    %c6 = arith.constant 6 : index
    %c0_77 = arith.constant 0 : index
    %c0_78 = arith.constant 0 : index
    %189 = vector.load %arg3[%c6, %c0_77, %c0_78] : memref<14x14x49xf32, #tpu.memory_space<vmem>>, vector<1x14x49xf32>
    %190 = vector.shape_cast %189 : vector<1x14x49xf32> to vector<14x49xf32>
    %cst_79 = arith.constant dense<0.000000e+00> : vector<8x49xf32>
    %191 = tpu.matmul %186, %190, %cst_79 {dimension_numbers = #tpu.dot_dimension_numbers<[1], [0], [0], [1], [0, 0, 1, 1], [], []>} : vector<8x14xf32>, vector<14x49xf32>, vector<8x49xf32> -> vector<8x49xf32>
    %192 = arith.addf %188, %191 : vector<8x49xf32>
    %193 = arith.index_cast %10 : i32 to index
    %c0_80 = arith.constant 0 : index
    %194 = vector.load %arg5[%193, %c0_80] : memref<8x49xf32, #tpu.memory_space<vmem>>, vector<8x49xf32>
    tpu.vector_store %arg5[%193, %c0_80], %192 {strides = array<i32>} : memref<8x49xf32, #tpu.memory_space<vmem>>, vector<8x49xf32>,
    %195 = arith.index_cast %10 : i32 to index
    %c294 = arith.constant 294 : index
    %196 = vector.load %arg6[%195, %c294] : memref<8x588xf32, #tpu.memory_space<vmem>>, vector<8x42xf32>
    %197 = vector.extract_strided_slice %196 {offsets = [0, 0], sizes = [8, 14], strides = [1, 1]} : vector<8x42xf32> to vector<8x14xf32>
    %198 = vector.extract_strided_slice %196 {offsets = [0, 14], sizes = [8, 14], strides = [1, 1]} : vector<8x42xf32> to vector<8x14xf32>
    %199 = vector.extract_strided_slice %196 {offsets = [0, 28], sizes = [8, 14], strides = [1, 1]} : vector<8x42xf32> to vector<8x14xf32>
    %cst_81 = arith.constant dense<0.000000e+00> : vector<8x8xf32>
    %200 = tpu.matmul %197, %198, %cst_81 {dimension_numbers = #tpu.dot_dimension_numbers<[1], [1], [0], [0], [0, 0, 1, 0], [], []>} : vector<8x14xf32>, vector<8x14xf32>, vector<8x8xf32> -> vector<8x8xf32>
    %cst_82 = arith.constant dense<0xFF800000> : vector<8xf32>
    %201 = vector.multi_reduction <maximumf>, %200, %cst_82 [1] : vector<8x8xf32> to vector<8xf32>
    %202 = vector.shape_cast %201 : vector<8xf32> to vector<8x1xf32>
    %203 = vector.broadcast %202 : vector<8x1xf32> to vector<8x8xf32>
    %204 = arith.subf %200, %203 : vector<8x8xf32>
    %205 = math.exp %204 : vector<8x8xf32>
    %cst_83 = arith.constant dense<0.000000e+00> : vector<8xf32>
    %206 = vector.multi_reduction <add>, %205, %cst_83 [1] : vector<8x8xf32> to vector<8xf32>
    %207 = vector.shape_cast %206 : vector<8xf32> to vector<8x1xf32>
    %cst_84 = arith.constant 1.000000e+00 : f32
    %208 = vector.broadcast %cst_84 : f32 to vector<8x1xf32>
    %209 = arith.divf %208, %207 : vector<8x1xf32>
    %cst_85 = arith.constant dense<0.000000e+00> : vector<8x14xf32>
    %210 = tpu.matmul %205, %199, %cst_85 {dimension_numbers = #tpu.dot_dimension_numbers<[1], [0], [0], [1], [0, 0, 1, 1], [], []>} : vector<8x8xf32>, vector<8x14xf32>, vector<8x14xf32> -> vector<8x14xf32>
    %211 = vector.broadcast %209 : vector<8x1xf32> to vector<8x14xf32>
    %212 = arith.mulf %210, %211 : vector<8x14xf32>
    %213 = arith.index_cast %10 : i32 to index
    %c0_86 = arith.constant 0 : index
    %214 = vector.load %arg5[%213, %c0_86] : memref<8x49xf32, #tpu.memory_space<vmem>>, vector<8x49xf32>
    %c7 = arith.constant 7 : index
    %c0_87 = arith.constant 0 : index
    %c0_88 = arith.constant 0 : index
    %215 = vector.load %arg3[%c7, %c0_87, %c0_88] : memref<14x14x49xf32, #tpu.memory_space<vmem>>, vector<1x14x49xf32>
    %216 = vector.shape_cast %215 : vector<1x14x49xf32> to vector<14x49xf32>
    %cst_89 = arith.constant dense<0.000000e+00> : vector<8x49xf32>
    %217 = tpu.matmul %212, %216, %cst_89 {dimension_numbers = #tpu.dot_dimension_numbers<[1], [0], [0], [1], [0, 0, 1, 1], [], []>} : vector<8x14xf32>, vector<14x49xf32>, vector<8x49xf32> -> vector<8x49xf32>
    %218 = arith.addf %214, %217 : vector<8x49xf32>
    %219 = arith.index_cast %10 : i32 to index
    %c0_90 = arith.constant 0 : index
    %220 = vector.load %arg5[%219, %c0_90] : memref<8x49xf32, #tpu.memory_space<vmem>>, vector<8x49xf32>
    tpu.vector_store %arg5[%219, %c0_90], %218 {strides = array<i32>} : memref<8x49xf32, #tpu.memory_space<vmem>>, vector<8x49xf32>,
    %221 = arith.index_cast %10 : i32 to index
    %c336 = arith.constant 336 : index
    %222 = vector.load %arg6[%221, %c336] : memref<8x588xf32, #tpu.memory_space<vmem>>, vector<8x42xf32>
    %223 = vector.extract_strided_slice %222 {offsets = [0, 0], sizes = [8, 14], strides = [1, 1]} : vector<8x42xf32> to vector<8x14xf32>
    %224 = vector.extract_strided_slice %222 {offsets = [0, 14], sizes = [8, 14], strides = [1, 1]} : vector<8x42xf32> to vector<8x14xf32>
    %225 = vector.extract_strided_slice %222 {offsets = [0, 28], sizes = [8, 14], strides = [1, 1]} : vector<8x42xf32> to vector<8x14xf32>
    %cst_91 = arith.constant dense<0.000000e+00> : vector<8x8xf32>
    %226 = tpu.matmul %223, %224, %cst_91 {dimension_numbers = #tpu.dot_dimension_numbers<[1], [1], [0], [0], [0, 0, 1, 0], [], []>} : vector<8x14xf32>, vector<8x14xf32>, vector<8x8xf32> -> vector<8x8xf32>
    %cst_92 = arith.constant dense<0xFF800000> : vector<8xf32>
    %227 = vector.multi_reduction <maximumf>, %226, %cst_92 [1] : vector<8x8xf32> to vector<8xf32>
    %228 = vector.shape_cast %227 : vector<8xf32> to vector<8x1xf32>
    %229 = vector.broadcast %228 : vector<8x1xf32> to vector<8x8xf32>
    %230 = arith.subf %226, %229 : vector<8x8xf32>
    %231 = math.exp %230 : vector<8x8xf32>
    %cst_93 = arith.constant dense<0.000000e+00> : vector<8xf32>
    %232 = vector.multi_reduction <add>, %231, %cst_93 [1] : vector<8x8xf32> to vector<8xf32>
    %233 = vector.shape_cast %232 : vector<8xf32> to vector<8x1xf32>
    %cst_94 = arith.constant 1.000000e+00 : f32
    %234 = vector.broadcast %cst_94 : f32 to vector<8x1xf32>
    %235 = arith.divf %234, %233 : vector<8x1xf32>
    %cst_95 = arith.constant dense<0.000000e+00> : vector<8x14xf32>
    %236 = tpu.matmul %231, %225, %cst_95 {dimension_numbers = #tpu.dot_dimension_numbers<[1], [0], [0], [1], [0, 0, 1, 1], [], []>} : vector<8x8xf32>, vector<8x14xf32>, vector<8x14xf32> -> vector<8x14xf32>
    %237 = vector.broadcast %235 : vector<8x1xf32> to vector<8x14xf32>
    %238 = arith.mulf %236, %237 : vector<8x14xf32>
    %239 = arith.index_cast %10 : i32 to index
    %c0_96 = arith.constant 0 : index
    %240 = vector.load %arg5[%239, %c0_96] : memref<8x49xf32, #tpu.memory_space<vmem>>, vector<8x49xf32>
    %c8 = arith.constant 8 : index
    %c0_97 = arith.constant 0 : index
    %c0_98 = arith.constant 0 : index
    %241 = vector.load %arg3[%c8, %c0_97, %c0_98] : memref<14x14x49xf32, #tpu.memory_space<vmem>>, vector<1x14x49xf32>
    %242 = vector.shape_cast %241 : vector<1x14x49xf32> to vector<14x49xf32>
    %cst_99 = arith.constant dense<0.000000e+00> : vector<8x49xf32>
    %243 = tpu.matmul %238, %242, %cst_99 {dimension_numbers = #tpu.dot_dimension_numbers<[1], [0], [0], [1], [0, 0, 1, 1], [], []>} : vector<8x14xf32>, vector<14x49xf32>, vector<8x49xf32> -> vector<8x49xf32>
    %244 = arith.addf %240, %243 : vector<8x49xf32>
    %245 = arith.index_cast %10 : i32 to index
    %c0_100 = arith.constant 0 : index
    %246 = vector.load %arg5[%245, %c0_100] : memref<8x49xf32, #tpu.memory_space<vmem>>, vector<8x49xf32>
    tpu.vector_store %arg5[%245, %c0_100], %244 {strides = array<i32>} : memref<8x49xf32, #tpu.memory_space<vmem>>, vector<8x49xf32>,
    %247 = arith.index_cast %10 : i32 to index
    %c378 = arith.constant 378 : index
    %248 = vector.load %arg6[%247, %c378] : memref<8x588xf32, #tpu.memory_space<vmem>>, vector<8x42xf32>
    %249 = vector.extract_strided_slice %248 {offsets = [0, 0], sizes = [8, 14], strides = [1, 1]} : vector<8x42xf32> to vector<8x14xf32>
    %250 = vector.extract_strided_slice %248 {offsets = [0, 14], sizes = [8, 14], strides = [1, 1]} : vector<8x42xf32> to vector<8x14xf32>
    %251 = vector.extract_strided_slice %248 {offsets = [0, 28], sizes = [8, 14], strides = [1, 1]} : vector<8x42xf32> to vector<8x14xf32>
    %cst_101 = arith.constant dense<0.000000e+00> : vector<8x8xf32>
    %252 = tpu.matmul %249, %250, %cst_101 {dimension_numbers = #tpu.dot_dimension_numbers<[1], [1], [0], [0], [0, 0, 1, 0], [], []>} : vector<8x14xf32>, vector<8x14xf32>, vector<8x8xf32> -> vector<8x8xf32>
    %cst_102 = arith.constant dense<0xFF800000> : vector<8xf32>
    %253 = vector.multi_reduction <maximumf>, %252, %cst_102 [1] : vector<8x8xf32> to vector<8xf32>
    %254 = vector.shape_cast %253 : vector<8xf32> to vector<8x1xf32>
    %255 = vector.broadcast %254 : vector<8x1xf32> to vector<8x8xf32>
    %256 = arith.subf %252, %255 : vector<8x8xf32>
    %257 = math.exp %256 : vector<8x8xf32>
    %cst_103 = arith.constant dense<0.000000e+00> : vector<8xf32>
    %258 = vector.multi_reduction <add>, %257, %cst_103 [1] : vector<8x8xf32> to vector<8xf32>
    %259 = vector.shape_cast %258 : vector<8xf32> to vector<8x1xf32>
    %cst_104 = arith.constant 1.000000e+00 : f32
    %260 = vector.broadcast %cst_104 : f32 to vector<8x1xf32>
    %261 = arith.divf %260, %259 : vector<8x1xf32>
    %cst_105 = arith.constant dense<0.000000e+00> : vector<8x14xf32>
    %262 = tpu.matmul %257, %251, %cst_105 {dimension_numbers = #tpu.dot_dimension_numbers<[1], [0], [0], [1], [0, 0, 1, 1], [], []>} : vector<8x8xf32>, vector<8x14xf32>, vector<8x14xf32> -> vector<8x14xf32>
    %263 = vector.broadcast %261 : vector<8x1xf32> to vector<8x14xf32>
    %264 = arith.mulf %262, %263 : vector<8x14xf32>
    %265 = arith.index_cast %10 : i32 to index
    %c0_106 = arith.constant 0 : index
    %266 = vector.load %arg5[%265, %c0_106] : memref<8x49xf32, #tpu.memory_space<vmem>>, vector<8x49xf32>
    %c9 = arith.constant 9 : index
    %c0_107 = arith.constant 0 : index
    %c0_108 = arith.constant 0 : index
    %267 = vector.load %arg3[%c9, %c0_107, %c0_108] : memref<14x14x49xf32, #tpu.memory_space<vmem>>, vector<1x14x49xf32>
    %268 = vector.shape_cast %267 : vector<1x14x49xf32> to vector<14x49xf32>
    %cst_109 = arith.constant dense<0.000000e+00> : vector<8x49xf32>
    %269 = tpu.matmul %264, %268, %cst_109 {dimension_numbers = #tpu.dot_dimension_numbers<[1], [0], [0], [1], [0, 0, 1, 1], [], []>} : vector<8x14xf32>, vector<14x49xf32>, vector<8x49xf32> -> vector<8x49xf32>
    %270 = arith.addf %266, %269 : vector<8x49xf32>
    %271 = arith.index_cast %10 : i32 to index
    %c0_110 = arith.constant 0 : index
    %272 = vector.load %arg5[%271, %c0_110] : memref<8x49xf32, #tpu.memory_space<vmem>>, vector<8x49xf32>
    tpu.vector_store %arg5[%271, %c0_110], %270 {strides = array<i32>} : memref<8x49xf32, #tpu.memory_space<vmem>>, vector<8x49xf32>,
    %273 = arith.index_cast %10 : i32 to index
    %c420 = arith.constant 420 : index
    %274 = vector.load %arg6[%273, %c420] : memref<8x588xf32, #tpu.memory_space<vmem>>, vector<8x42xf32>
    %275 = vector.extract_strided_slice %274 {offsets = [0, 0], sizes = [8, 14], strides = [1, 1]} : vector<8x42xf32> to vector<8x14xf32>
    %276 = vector.extract_strided_slice %274 {offsets = [0, 14], sizes = [8, 14], strides = [1, 1]} : vector<8x42xf32> to vector<8x14xf32>
    %277 = vector.extract_strided_slice %274 {offsets = [0, 28], sizes = [8, 14], strides = [1, 1]} : vector<8x42xf32> to vector<8x14xf32>
    %cst_111 = arith.constant dense<0.000000e+00> : vector<8x8xf32>
    %278 = tpu.matmul %275, %276, %cst_111 {dimension_numbers = #tpu.dot_dimension_numbers<[1], [1], [0], [0], [0, 0, 1, 0], [], []>} : vector<8x14xf32>, vector<8x14xf32>, vector<8x8xf32> -> vector<8x8xf32>
    %cst_112 = arith.constant dense<0xFF800000> : vector<8xf32>
    %279 = vector.multi_reduction <maximumf>, %278, %cst_112 [1] : vector<8x8xf32> to vector<8xf32>
    %280 = vector.shape_cast %279 : vector<8xf32> to vector<8x1xf32>
    %281 = vector.broadcast %280 : vector<8x1xf32> to vector<8x8xf32>
    %282 = arith.subf %278, %281 : vector<8x8xf32>
    %283 = math.exp %282 : vector<8x8xf32>
    %cst_113 = arith.constant dense<0.000000e+00> : vector<8xf32>
    %284 = vector.multi_reduction <add>, %283, %cst_113 [1] : vector<8x8xf32> to vector<8xf32>
    %285 = vector.shape_cast %284 : vector<8xf32> to vector<8x1xf32>
    %cst_114 = arith.constant 1.000000e+00 : f32
    %286 = vector.broadcast %cst_114 : f32 to vector<8x1xf32>
    %287 = arith.divf %286, %285 : vector<8x1xf32>
    %cst_115 = arith.constant dense<0.000000e+00> : vector<8x14xf32>
    %288 = tpu.matmul %283, %277, %cst_115 {dimension_numbers = #tpu.dot_dimension_numbers<[1], [0], [0], [1], [0, 0, 1, 1], [], []>} : vector<8x8xf32>, vector<8x14xf32>, vector<8x14xf32> -> vector<8x14xf32>
    %289 = vector.broadcast %287 : vector<8x1xf32> to vector<8x14xf32>
    %290 = arith.mulf %288, %289 : vector<8x14xf32>
    %291 = arith.index_cast %10 : i32 to index
    %c0_116 = arith.constant 0 : index
    %292 = vector.load %arg5[%291, %c0_116] : memref<8x49xf32, #tpu.memory_space<vmem>>, vector<8x49xf32>
    %c10 = arith.constant 10 : index
    %c0_117 = arith.constant 0 : index
    %c0_118 = arith.constant 0 : index
    %293 = vector.load %arg3[%c10, %c0_117, %c0_118] : memref<14x14x49xf32, #tpu.memory_space<vmem>>, vector<1x14x49xf32>
    %294 = vector.shape_cast %293 : vector<1x14x49xf32> to vector<14x49xf32>
    %cst_119 = arith.constant dense<0.000000e+00> : vector<8x49xf32>
    %295 = tpu.matmul %290, %294, %cst_119 {dimension_numbers = #tpu.dot_dimension_numbers<[1], [0], [0], [1], [0, 0, 1, 1], [], []>} : vector<8x14xf32>, vector<14x49xf32>, vector<8x49xf32> -> vector<8x49xf32>
    %296 = arith.addf %292, %295 : vector<8x49xf32>
    %297 = arith.index_cast %10 : i32 to index
    %c0_120 = arith.constant 0 : index
    %298 = vector.load %arg5[%297, %c0_120] : memref<8x49xf32, #tpu.memory_space<vmem>>, vector<8x49xf32>
    tpu.vector_store %arg5[%297, %c0_120], %296 {strides = array<i32>} : memref<8x49xf32, #tpu.memory_space<vmem>>, vector<8x49xf32>,
    %299 = arith.index_cast %10 : i32 to index
    %c462 = arith.constant 462 : index
    %300 = vector.load %arg6[%299, %c462] : memref<8x588xf32, #tpu.memory_space<vmem>>, vector<8x42xf32>
    %301 = vector.extract_strided_slice %300 {offsets = [0, 0], sizes = [8, 14], strides = [1, 1]} : vector<8x42xf32> to vector<8x14xf32>
    %302 = vector.extract_strided_slice %300 {offsets = [0, 14], sizes = [8, 14], strides = [1, 1]} : vector<8x42xf32> to vector<8x14xf32>
    %303 = vector.extract_strided_slice %300 {offsets = [0, 28], sizes = [8, 14], strides = [1, 1]} : vector<8x42xf32> to vector<8x14xf32>
    %cst_121 = arith.constant dense<0.000000e+00> : vector<8x8xf32>
    %304 = tpu.matmul %301, %302, %cst_121 {dimension_numbers = #tpu.dot_dimension_numbers<[1], [1], [0], [0], [0, 0, 1, 0], [], []>} : vector<8x14xf32>, vector<8x14xf32>, vector<8x8xf32> -> vector<8x8xf32>
    %cst_122 = arith.constant dense<0xFF800000> : vector<8xf32>
    %305 = vector.multi_reduction <maximumf>, %304, %cst_122 [1] : vector<8x8xf32> to vector<8xf32>
    %306 = vector.shape_cast %305 : vector<8xf32> to vector<8x1xf32>
    %307 = vector.broadcast %306 : vector<8x1xf32> to vector<8x8xf32>
    %308 = arith.subf %304, %307 : vector<8x8xf32>
    %309 = math.exp %308 : vector<8x8xf32>
    %cst_123 = arith.constant dense<0.000000e+00> : vector<8xf32>
    %310 = vector.multi_reduction <add>, %309, %cst_123 [1] : vector<8x8xf32> to vector<8xf32>
    %311 = vector.shape_cast %310 : vector<8xf32> to vector<8x1xf32>
    %cst_124 = arith.constant 1.000000e+00 : f32
    %312 = vector.broadcast %cst_124 : f32 to vector<8x1xf32>
    %313 = arith.divf %312, %311 : vector<8x1xf32>
    %cst_125 = arith.constant dense<0.000000e+00> : vector<8x14xf32>
    %314 = tpu.matmul %309, %303, %cst_125 {dimension_numbers = #tpu.dot_dimension_numbers<[1], [0], [0], [1], [0, 0, 1, 1], [], []>} : vector<8x8xf32>, vector<8x14xf32>, vector<8x14xf32> -> vector<8x14xf32>
    %315 = vector.broadcast %313 : vector<8x1xf32> to vector<8x14xf32>
    %316 = arith.mulf %314, %315 : vector<8x14xf32>
    %317 = arith.index_cast %10 : i32 to index
    %c0_126 = arith.constant 0 : index
    %318 = vector.load %arg5[%317, %c0_126] : memref<8x49xf32, #tpu.memory_space<vmem>>, vector<8x49xf32>
    %c11 = arith.constant 11 : index
    %c0_127 = arith.constant 0 : index
    %c0_128 = arith.constant 0 : index
    %319 = vector.load %arg3[%c11, %c0_127, %c0_128] : memref<14x14x49xf32, #tpu.memory_space<vmem>>, vector<1x14x49xf32>
    %320 = vector.shape_cast %319 : vector<1x14x49xf32> to vector<14x49xf32>
    %cst_129 = arith.constant dense<0.000000e+00> : vector<8x49xf32>
    %321 = tpu.matmul %316, %320, %cst_129 {dimension_numbers = #tpu.dot_dimension_numbers<[1], [0], [0], [1], [0, 0, 1, 1], [], []>} : vector<8x14xf32>, vector<14x49xf32>, vector<8x49xf32> -> vector<8x49xf32>
    %322 = arith.addf %318, %321 : vector<8x49xf32>
    %323 = arith.index_cast %10 : i32 to index
    %c0_130 = arith.constant 0 : index
    %324 = vector.load %arg5[%323, %c0_130] : memref<8x49xf32, #tpu.memory_space<vmem>>, vector<8x49xf32>
    tpu.vector_store %arg5[%323, %c0_130], %322 {strides = array<i32>} : memref<8x49xf32, #tpu.memory_space<vmem>>, vector<8x49xf32>,
    %325 = arith.index_cast %10 : i32 to index
    %c504 = arith.constant 504 : index
    %326 = vector.load %arg6[%325, %c504] : memref<8x588xf32, #tpu.memory_space<vmem>>, vector<8x42xf32>
    %327 = vector.extract_strided_slice %326 {offsets = [0, 0], sizes = [8, 14], strides = [1, 1]} : vector<8x42xf32> to vector<8x14xf32>
    %328 = vector.extract_strided_slice %326 {offsets = [0, 14], sizes = [8, 14], strides = [1, 1]} : vector<8x42xf32> to vector<8x14xf32>
    %329 = vector.extract_strided_slice %326 {offsets = [0, 28], sizes = [8, 14], strides = [1, 1]} : vector<8x42xf32> to vector<8x14xf32>
    %cst_131 = arith.constant dense<0.000000e+00> : vector<8x8xf32>
    %330 = tpu.matmul %327, %328, %cst_131 {dimension_numbers = #tpu.dot_dimension_numbers<[1], [1], [0], [0], [0, 0, 1, 0], [], []>} : vector<8x14xf32>, vector<8x14xf32>, vector<8x8xf32> -> vector<8x8xf32>
    %cst_132 = arith.constant dense<0xFF800000> : vector<8xf32>
    %331 = vector.multi_reduction <maximumf>, %330, %cst_132 [1] : vector<8x8xf32> to vector<8xf32>
    %332 = vector.shape_cast %331 : vector<8xf32> to vector<8x1xf32>
    %333 = vector.broadcast %332 : vector<8x1xf32> to vector<8x8xf32>
    %334 = arith.subf %330, %333 : vector<8x8xf32>
    %335 = math.exp %334 : vector<8x8xf32>
    %cst_133 = arith.constant dense<0.000000e+00> : vector<8xf32>
    %336 = vector.multi_reduction <add>, %335, %cst_133 [1] : vector<8x8xf32> to vector<8xf32>
    %337 = vector.shape_cast %336 : vector<8xf32> to vector<8x1xf32>
    %cst_134 = arith.constant 1.000000e+00 : f32
    %338 = vector.broadcast %cst_134 : f32 to vector<8x1xf32>
    %339 = arith.divf %338, %337 : vector<8x1xf32>
    %cst_135 = arith.constant dense<0.000000e+00> : vector<8x14xf32>
    %340 = tpu.matmul %335, %329, %cst_135 {dimension_numbers = #tpu.dot_dimension_numbers<[1], [0], [0], [1], [0, 0, 1, 1], [], []>} : vector<8x8xf32>, vector<8x14xf32>, vector<8x14xf32> -> vector<8x14xf32>
    %341 = vector.broadcast %339 : vector<8x1xf32> to vector<8x14xf32>
    %342 = arith.mulf %340, %341 : vector<8x14xf32>
    %343 = arith.index_cast %10 : i32 to index
    %c0_136 = arith.constant 0 : index
    %344 = vector.load %arg5[%343, %c0_136] : memref<8x49xf32, #tpu.memory_space<vmem>>, vector<8x49xf32>
    %c12 = arith.constant 12 : index
    %c0_137 = arith.constant 0 : index
    %c0_138 = arith.constant 0 : index
    %345 = vector.load %arg3[%c12, %c0_137, %c0_138] : memref<14x14x49xf32, #tpu.memory_space<vmem>>, vector<1x14x49xf32>
    %346 = vector.shape_cast %345 : vector<1x14x49xf32> to vector<14x49xf32>
    %cst_139 = arith.constant dense<0.000000e+00> : vector<8x49xf32>
    %347 = tpu.matmul %342, %346, %cst_139 {dimension_numbers = #tpu.dot_dimension_numbers<[1], [0], [0], [1], [0, 0, 1, 1], [], []>} : vector<8x14xf32>, vector<14x49xf32>, vector<8x49xf32> -> vector<8x49xf32>
    %348 = arith.addf %344, %347 : vector<8x49xf32>
    %349 = arith.index_cast %10 : i32 to index
    %c0_140 = arith.constant 0 : index
    %350 = vector.load %arg5[%349, %c0_140] : memref<8x49xf32, #tpu.memory_space<vmem>>, vector<8x49xf32>
    tpu.vector_store %arg5[%349, %c0_140], %348 {strides = array<i32>} : memref<8x49xf32, #tpu.memory_space<vmem>>, vector<8x49xf32>,
    %351 = arith.index_cast %10 : i32 to index
    %c546 = arith.constant 546 : index
    %352 = vector.load %arg6[%351, %c546] : memref<8x588xf32, #tpu.memory_space<vmem>>, vector<8x42xf32>
    %353 = vector.extract_strided_slice %352 {offsets = [0, 0], sizes = [8, 14], strides = [1, 1]} : vector<8x42xf32> to vector<8x14xf32>
    %354 = vector.extract_strided_slice %352 {offsets = [0, 14], sizes = [8, 14], strides = [1, 1]} : vector<8x42xf32> to vector<8x14xf32>
    %355 = vector.extract_strided_slice %352 {offsets = [0, 28], sizes = [8, 14], strides = [1, 1]} : vector<8x42xf32> to vector<8x14xf32>
    %cst_141 = arith.constant dense<0.000000e+00> : vector<8x8xf32>
    %356 = tpu.matmul %353, %354, %cst_141 {dimension_numbers = #tpu.dot_dimension_numbers<[1], [1], [0], [0], [0, 0, 1, 0], [], []>} : vector<8x14xf32>, vector<8x14xf32>, vector<8x8xf32> -> vector<8x8xf32>
    %cst_142 = arith.constant dense<0xFF800000> : vector<8xf32>
    %357 = vector.multi_reduction <maximumf>, %356, %cst_142 [1] : vector<8x8xf32> to vector<8xf32>
    %358 = vector.shape_cast %357 : vector<8xf32> to vector<8x1xf32>
    %359 = vector.broadcast %358 : vector<8x1xf32> to vector<8x8xf32>
    %360 = arith.subf %356, %359 : vector<8x8xf32>
    %361 = math.exp %360 : vector<8x8xf32>
    %cst_143 = arith.constant dense<0.000000e+00> : vector<8xf32>
    %362 = vector.multi_reduction <add>, %361, %cst_143 [1] : vector<8x8xf32> to vector<8xf32>
    %363 = vector.shape_cast %362 : vector<8xf32> to vector<8x1xf32>
    %cst_144 = arith.constant 1.000000e+00 : f32
    %364 = vector.broadcast %cst_144 : f32 to vector<8x1xf32>
    %365 = arith.divf %364, %363 : vector<8x1xf32>
    %cst_145 = arith.constant dense<0.000000e+00> : vector<8x14xf32>
    %366 = tpu.matmul %361, %355, %cst_145 {dimension_numbers = #tpu.dot_dimension_numbers<[1], [0], [0], [1], [0, 0, 1, 1], [], []>} : vector<8x8xf32>, vector<8x14xf32>, vector<8x14xf32> -> vector<8x14xf32>
    %367 = vector.broadcast %365 : vector<8x1xf32> to vector<8x14xf32>
    %368 = arith.mulf %366, %367 : vector<8x14xf32>
    %369 = arith.index_cast %10 : i32 to index
    %c0_146 = arith.constant 0 : index
    %370 = vector.load %arg5[%369, %c0_146] : memref<8x49xf32, #tpu.memory_space<vmem>>, vector<8x49xf32>
    %c13 = arith.constant 13 : index
    %c0_147 = arith.constant 0 : index
    %c0_148 = arith.constant 0 : index
    %371 = vector.load %arg3[%c13, %c0_147, %c0_148] : memref<14x14x49xf32, #tpu.memory_space<vmem>>, vector<1x14x49xf32>
    %372 = vector.shape_cast %371 : vector<1x14x49xf32> to vector<14x49xf32>
    %cst_149 = arith.constant dense<0.000000e+00> : vector<8x49xf32>
    %373 = tpu.matmul %368, %372, %cst_149 {dimension_numbers = #tpu.dot_dimension_numbers<[1], [0], [0], [1], [0, 0, 1, 1], [], []>} : vector<8x14xf32>, vector<14x49xf32>, vector<8x49xf32> -> vector<8x49xf32>
    %374 = arith.addf %370, %373 : vector<8x49xf32>
    %375 = arith.index_cast %10 : i32 to index
    %c0_150 = arith.constant 0 : index
    %376 = vector.load %arg5[%375, %c0_150] : memref<8x49xf32, #tpu.memory_space<vmem>>, vector<8x49xf32>
    tpu.vector_store %arg5[%375, %c0_150], %374 {strides = array<i32>} : memref<8x49xf32, #tpu.memory_space<vmem>>, vector<8x49xf32>,
    %c1_i32_151 = arith.constant 1 : i32
    return
  }
  func.func @transform_0(%arg0: i32) -> (i32, i32) {
    %c0_i32 = arith.constant 0 : i32
    %c0_i32_0 = arith.constant 0 : i32
    return %arg0, %c0_i32 : i32, i32
  }
  func.func @transform_1(%arg0: i32) -> (i32, i32) {
    %c0_i32 = arith.constant 0 : i32
    %c0_i32_0 = arith.constant 0 : i32
    %c0_i32_1 = arith.constant 0 : i32
    return %c0_i32, %c0_i32_0 : i32, i32
  }
  func.func @transform_2(%arg0: i32) -> (i32, i32, i32) {
    %c0_i32 = arith.constant 0 : i32
    %c0_i32_0 = arith.constant 0 : i32
    %c0_i32_1 = arith.constant 0 : i32
    %c0_i32_2 = arith.constant 0 : i32
    return %c0_i32, %c0_i32_0, %c0_i32_1 : i32, i32, i32
  }
  func.func @transform_3(%arg0: i32) -> (i32, i32) {
    %c0_i32 = arith.constant 0 : i32
    %c0_i32_0 = arith.constant 0 : i32
    %c0_i32_1 = arith.constant 0 : i32
    return %c0_i32, %c0_i32_0 : i32, i32
  }
  func.func @transform_4(%arg0: i32) -> (i32, i32) {
    %c0_i32 = arith.constant 0 : i32
    %c0_i32_0 = arith.constant 0 : i32
    return %arg0, %c0_i32 : i32, i32
  }
}

</mosaic_0001>

<bundles_post_ra>
// kernel: channel_attention_forward.1
= control target key start
LH: loop header
LB: loop body
LE: loop exit
PB: predicated region body
PF: predicated region fallthrough
CT: control target
= control target key end

     0   :  { %s4806_s15 = smov 0   ;;  %s5392_s0 = inlined_call_operand.vmem [shape: f32[16,49], index: 0, kind: input, shape index: {}]   ;;  %s5393_s1 = inlined_call_operand.vmem [shape: f32[49,588], index: 1, kind: input, shape index: {}]   ;;  %s5394_s2 = inlined_call_operand.vmem [shape: f32[14,14,49], index: 2, kind: input, shape index: {}]   ;;  %s5395_s3 = inlined_call_operand.vmem [shape: f32[1,49], index: 3, kind: input, shape index: {}]   ;;  %s5396_s4 = inlined_call_operand.vmem [shape: f32[16,49], index: 4, kind: output, shape index: {}]  }
   0x1 LB: > { %s4054_s16 = sadd.s32 4294967295, %s4734_s15   ;;  %p4058_p0 = scmp.ge.s32.totalorder %s4734_s15, 1  ;;  %s4734_s15 = sphi %s4806_s15, %s14_s15  }
   0x2   : > { %p161_p1 = scmp.lt.s32.totalorder %s4734_s15, 3 }
   0x4   : > { %p162_p2 = pnand %p4058_p0, %p161_p1 }
   0x5   : > { %v195_v0 = vld [vmem:[%s5393_s1 + $0x8] sm:$0xff] (!%p162_p2)  ;;  %v200_v1 = vld [vmem:[%s5393_s1 + $0x30] sm:$0xff] (!%p162_p2)  ;;  %v194_v2 = vld [vmem:[%s5393_s1] sm:$0xff] (!%p162_p2)  ;;  %p4823_p3 = scmp.lt.s32.totalorder (!%p162_p2), %s4054_s16, 1  ;;  %v4736_v7 = vmov (!%p162_p2), 0.0   ;;  %vm233_vm0 = vcmask (!%p162_p2), 1040384  }
   0x6   : > { %165 = sbr.rel (%p162_p2) target bundleno = 6227 (0x1853), region = 36  ;;  %v4529_v3 = vpack.c.bf16 (!%p162_p2), %v200_v1, %v195_v0  ;;  %v199_v4 = vld [vmem:[%s5393_s1 + $0x28] sm:$0xff] (!%p162_p2)  ;;  %v205_v5 = vld [vmem:[%s5393_s1 + $0x58] sm:$0xff] (!%p162_p2)  ;;  %v210_v6 = vld [vmem:[%s5393_s1 + $0x80] sm:$0xff] (!%p162_p2)  ;;  %313 = vmatprep.mubr.f32.mxu0 (!%p162_p2), %v4736_v7  ;;  %384 = vmatprep.mubr.f32.mxu1 (!%p162_p2), %v4736_v7  ;;  %vm229_vm1 = vcmask (!%p162_p2), 400384   ;;  %vm4737_vm2 = vmmov (!%p162_p2), 0  }
   0x7   : > { %v4531_v8 = vpack.c.bf16 (!%p162_p2), %v199_v4, %v194_v2  ;;  %v4533_v9 = vpack.c.bf16 (!%p162_p2), %v210_v6, %v205_v5  ;;  %v204_v10 = vld [vmem:[%s5393_s1 + $0x50] sm:$0xff] (!%p162_p2)  ;;  %v209_v11 = vld [vmem:[%s5393_s1 + $0x78] sm:$0xff] (!%p162_p2)  ;;  %v215_v12 = vld [vmem:[%s5393_s1 + $0xa8] sm:$0xff] (!%p162_p2)  ;;  %s4738_s5 = smov (!%p162_p2), 100   ;;  %s4739_s6 = smov (!%p162_p2), 114   ;;  %vm482_vm3 = vcmask (!%p162_p2), 113664  }
   0x8   : > { %4530 = vmatprep.subr.bf16.mxu0 (!%p162_p2), %v4529_v3  ;;  %v220_v13 = vld [vmem:[%s5393_s1 + $0xd0] sm:$0xff] (!%p162_p2)  ;;  %v4535_v14 = vpack.c.bf16 (!%p162_p2), %v209_v11, %v204_v10  ;;  %v214_v16 = vld [vmem:[%s5393_s1 + $0xa0] sm:$0xff] (!%p162_p2)  ;;  %v219_v17 = vld [vmem:[%s5393_s1 + $0xc8] sm:$0xff] (!%p162_p2)  ;;  %vm557_vm4 = vcmask (!%p162_p2), 64512   ;;  %s4740_s7 = smov (!%p162_p2), 72   ;;  %v4741_v54 = vmov (!%p162_p2), 0.0|0.0  }
   0x9   : > { %4532 = vmatpush1.bf16.msra.mxu0 (!%p162_p2), %v4531_v8  ;;  %v4537_v15 = vpack.c.bf16 (!%p162_p2), %v220_v13, %v215_v12  ;;  %v4539_v18 = vpack.c.bf16 (!%p162_p2), %v219_v17, %v214_v16  ;;  %v225_v19 = vld [vmem:[%s5393_s1 + $0xf8] sm:$0x1] (!%p162_p2)  ;;  %v224_v20 = vld [vmem:[%s5393_s1 + $0xf0] sm:$0x1] (!%p162_p2)  ;;  %v202_v23 = vld [vmem:[%s5393_s1 + $0x40] sm:$0xff] (!%p162_p2)  ;;  %s4743_s26 = smov (!%p162_p2), 58  }
   0xa   : > { %4534 = vmatprep.subr.bf16.mxu0 (!%p162_p2), %v4533_v9  ;;  %v197_v22 = vld [vmem:[%s5393_s1 + $0x18] sm:$0xff] (!%p162_p2)  ;;  %v196_v24 = vld [vmem:[%s5393_s1 + $0x10] sm:$0xff] (!%p162_p2)  ;;  %v207_v27 = vld [vmem:[%s5393_s1 + $0x68] sm:$0xff] (!%p162_p2)  ;;  %s4744_s27 = smov (!%p162_p2), 30   ;;  %s4745_s28 = smov (!%p162_p2), 44   ;;  %vm652_vm5 = vcmask (!%p162_p2), 1045504  }
   0xb   : > { %v4541_v25 = vpack.c.bf16 (!%p162_p2), %v202_v23, %v197_v22  ;;  %v201_v26 = vld [vmem:[%s5393_s1 + $0x38] sm:$0xff] (!%p162_p2)  ;;  %v212_v28 = vld [vmem:[%s5393_s1 + $0x90] sm:$0xff] (!%p162_p2)  ;;  %v206_v31 = vld [vmem:[%s5393_s1 + $0x60] sm:$0xff] (!%p162_p2)  ;;  %vm4746_vm6 = vmmov (!%p162_p2), 1   ;;  %vm465_vm8 = vcmask (!%p162_p2), 621568   ;;  %s4749_s19 = smov (!%p162_p2), 2  }
   0xc   : > { %v4543_v29 = vpack.c.bf16 (!%p162_p2), %v201_v26, %v196_v24  ;;  %v4545_v30 = vpack.c.bf16 (!%p162_p2), %v212_v28, %v207_v27  ;;  %v211_v32 = vld [vmem:[%s5393_s1 + $0x88] sm:$0xff] (!%p162_p2)  ;;  %v217_v33 = vld [vmem:[%s5393_s1 + $0xb8] sm:$0xff] (!%p162_p2)  ;;  %v222_v34 = vld [vmem:[%s5393_s1 + $0xe0] sm:$0xff] (!%p162_p2)  ;;  %vm1236_vm9 = vcmask (!%p162_p2), 15360   ;;  %s4750_s24 = smov (!%p162_p2), 102   ;;  %s4751_s25 = smov (!%p162_p2), 88  }
   0xd   : > { %s5401_s16 = smov (!%p4823_p3, %s4054_s16), 1  ;;  %4536 = vmatpush1.bf16.msra.mxu0 %v4535_v14  ;;  %4542 = vmatprep.subr.bf16.mxu1 %v4541_v25  ;;  %v4547_v35 = vpack.c.bf16 %v211_v32, %v206_v31  ;;  %v4549_v36 = vpack.c.bf16 %v222_v34, %v217_v33  ;;  %v216_v37 = vld [vmem:[%s5393_s1 + $0xb0] sm:$0xff]  ;;  %v221_v38 = vld [vmem:[%s5393_s1 + $0xd8] sm:$0xff]  ;;  %v227_v40 = vld [vmem:[%s5393_s1 + $0x108] sm:$0x1]  ;;  %s4755_s29 = smov 118  }
   0xe   : > { %s4059_s18 = sshll.u32 %s5401_s16, 3  ;;  %4538 = vmatprep.subr.bf16.mxu0 %v4537_v15  ;;  %4544 = vmatpush1.bf16.msra.mxu1 %v4543_v29  ;;  %v4551_v39 = vpack.c.bf16 %v221_v38, %v216_v37  ;;  %v226_v41 = vld [vmem:[%s5393_s1 + $0x100] sm:$0x1]  ;;  %v203_v52 = vld [vmem:[%s5393_s1 + $0x48] sm:$0xff]  ;;  %v208_v53 = vld [vmem:[%s5393_s1 + $0x70] sm:$0xff]  ;;  %s4747_s16 = smov 16  }
   0xf   : > { %s188_s23 = scalar_lea.vmem %s5392_s0, %s4059_s18  ;;  %4546 = vmatprep.subr.bf16.mxu1 %v4545_v30  ;;  %v198_v51 = vld [vmem:[%s5393_s1 + $0x20] sm:$0xff]  ;;  %v213_v56 = vld [vmem:[%s5393_s1 + $0x98] sm:$0xff]  ;;  %v223_v0 = vld [vmem:[%s5393_s1 + $0xe8] sm:$0xff]  ;;  %s5006_s9 = scalar_lea.vmem %s5396_s4, %s4059_s18  ;;  %vm1992_vm10 = vcmask 31744   ;;  %vm2748_vm11 = vcmask 48128  }
  0x10   : > { %v4873_v21 = vld [vmem:[%s188_s23] sm:$0xff]  ;;  %v4554_v55 = vpack.c.bf16 %v203_v52, %v198_v51  ;;  %v4557_v57 = vpack.c.bf16 %v213_v56, %v208_v53  ;;  %s4742_s23 = smov 86   ;;  %v228_v2 = vld [vmem:[%s5393_s1 + $0x110] sm:$0x1]  ;;  %v648_v4 = vld [vmem:[%s5394_s2 + $0x8] sm:$0x3f] }
  0x11   : > { %4540 = vmatpush1.bf16.msra.mxu0 %v4539_v18  ;;  %v218_v63 = vld [vmem:[%s5393_s1 + $0xc0] sm:$0xff]  ;;  %vm4994_vm7 = vmpackc.low %vm652_vm5, %vm4746_vm6  ;;  %s4748_s18 = smov 116   ;;  %v4078_v32 = vld [vmem:[%s5394_s2 + $0x10] sm:$0xff]  ;;  %s4756_s8 = smov 60  }
  0x12   : > { %4061 = vmatprep.subr.msk.mxu0 %vm233_vm0, %v225_v19  ;;  %4548 = vmatpush1.bf16.msra.mxu1 %v4547_v35  ;;  %v4560_v1 = vpack.c.bf16 %v223_v0, %v218_v63  ;;  %v647_v3 = vld [vmem:[%s5394_s2] sm:$0xff]  ;;  %v4079_v33 = vld [vmem:[%s5394_s2 + $0x18] sm:$0x3f]  ;;  %s4757_s12 = smov 18   ;;  %s4758_s13 = smov 4  }
  0x13   : > { %4550 = vmatprep.subr.bf16.mxu1 %v4549_v36  ;;  %v4563_v5 = vpack.c.bf16 %v648_v4, %v647_v3  ;;  %v4069_v8 = vld [vmem:[%s5395_s3] ss:$0 sm:$0xff]  ;;  %v4567_v35 = vpack.c.bf16 %v4079_v33, %v4078_v32  ;;  %s4759_s21 = smov 104   ;;  %s4760_s22 = smov 90  }
  0x14   : > { %474 = vst.msk [vmem:[%s5006_s9] sm:$0xff] %vm229_vm1, %v4069_v8  ;;  %s4766_s11 = smov 20   ;;  %s4768_s17 = smov 106  }
  0x15   : > { %4062 = vmatpush1.msk.msra.mxu0 %vm233_vm0, %v224_v20  ;;  %s4770_s20 = smov 78   ;;  %s4779_s14 = smov 80  }
  0x16   : > { %4063 = vmatmul.mubr.msk.f32.vlgmr.msra.gmra.mrb[0].mxu0 %vm229_vm1, %v4873_v21  ;;  %4552 = vmatpush1.bf16.msra.mxu1 %v4551_v39 }
  0x17   : > { %4064 = vmatprep.subr.msk.mxu1 %vm233_vm0, %v227_v40  ;;  %4288 = vmatprep.mubr.msk.f32.mxu0 %vm4737_vm2, %v4736_v7 }
  0x18   : > { %4553 = vmatprep.subr.bf16.mxu0 %v4741_v54 }
  0x19   : > { %4555 = vmatpush3.bf16.msra.mxu0 %v4554_v55 }
  0x1a   : > { %4065 = vmatpush1.msk.msra.mxu1 %vm233_vm0, %v226_v41  ;;  %4556 = vmatprep.subr.bf16.mxu0 %v4741_v54 }
  0x1b   : > { %4066 = vmatmul.mubr.msk.f32.vlgmr.msra.gmra.mrb[0].mxu1 %vm229_vm1, %v4873_v21  ;;  %4291 = vmatprep.subr.mxu1 %v4736_v7  ;;  %v646_v17 = vld [vmem:[%s5006_s9] sm:$0xff] }
  0x1c   : > { %4293 = vmatprep.mubr.msk.f32.mxu1 %vm4737_vm2, %v4736_v7 }
  0x1d   : > { %4558 = vmatpush3.bf16.msra.mxu0 %v4557_v57 }
  0x1e   : > { %4559 = vmatprep.subr.bf16.mxu0 %v4741_v54 }
  0x21   : > { %4561 = vmatpush3.bf16.msra.mxu0 %v4560_v1 }
  0x22   : > { %4286 = vmatprep.subr.mxu0 %v4736_v7 }
  0x25   : > { %4287 = vmatpush3.msk.msra.mxu0 %vm233_vm0, %v228_v2 }
  0x26   : > { %4313 = vmatprep.subr.mxu0 %v4736_v7  ;;  %4289 = vmatmul.mubr.msk.f32.vlgmr.msra.gmra.mrb[2].mxu0 %vm229_vm1, %v4873_v21 }
  0x27   : > { %4315 = vmatprep.mubr.msk.f32.mxu0 %vm4737_vm2, %v4736_v7 }
  0xe9   : > { %v4929_v42 = vpop.f32.mrb[0].mxu0 }
  0xea   : > { %v4931_v43 = vpop.f32.mrb[1].mxu0  ;;  %569 = vrot.lane.b32.xlu1 %v4929_v42, %s4738_s5  ;;  %480 = vrot.lane.b32.xlu0 %v4929_v42, %s4739_s6  ;;  %s4765_s5 = smov 62  }
  0xee   : > { %v4935_v44 = vpop.f32.mrb[0].mxu1 }
  0xef   : > { %v4937_v45 = vpop.f32.mrb[1].mxu1 }
  0xf0   : > { %464 = vst [vmem:[#allocation2 + $0x18] sm:$0xff] %v4937_v45 }
  0xf9   : > { %v457_v31 = vpop.f32.mrb[2].mxu0 }
  0xfa   : > { %466 = vst.msk [vmem:[#allocation2 + $0x20] sm:$0xff] %vm465_vm8, %v457_v31  ;;  %v4290_v34 = vpop.f32.mrb[3].mxu0 }
 0x15c   : > { %v481_v46 = vpop.permute.xlu0 %480  ;;  %v570_v47 = vpop.permute.xlu1 %569 }
 0x15d   : > { %4292 = vmatpush3.xpose.msk.msra.mxu1 %vm482_vm3, %v481_v46 }
 0x15e   : > { %4296 = vmatprep.subr.mxu1 %v4736_v7 }
 0x160   : > { %4294 = vmatmul.mubr.msk.f32.vlgmr.msra.gmra.mrb[2].mxu1 %vm482_vm3, %v4929_v42 }
 0x161   : > { %4297 = vmatpush3.msra.mxu1 %v570_v47  ;;  %4298 = vmatprep.mubr.msk.f32.mxu1 %vm4737_vm2, %v4736_v7 }
 0x162   : > { %4562 = vmatprep.subr.bf16.mxu1 %v4741_v54 }
 0x233   : > { %v553_v48 = vpop.f32.mrb[2].mxu1 }
 0x234   : > { %v4295_v49 = vpop.f32.mrb[3].mxu1  ;;  %v558_v50 = vsel %vm557_vm4, %v553_v48, -inf }
 0x235   : > { %559 = vmax.xlane.f32.xlu0 %v558_v50 }
 0x24b   : > { %732 = vrot.lane.b32.xlu0 %v4929_v42, %s4740_s7  ;;  %s4775_s7 = smov 22  }
 0x2c2   : > { %v560_v58 = vpop.xlane.xlu0 %559 }
 0x2c3   : > { %v561_v59 = vsub.f32 %v553_v48, %v560_v58  ;;  %v4085_v58 = vld [vmem:[%s5394_s2 + $0x20] sm:$0xff] }
 0x2c5   : > { %v562_v60 = vmul.f32 1.442695, %v561_v59  ;;  %v4086_v59 = vld [vmem:[%s5394_s2 + $0x28] sm:$0x3f] }
 0x2c6   : > { %v733_v16 = vpop.permute.xlu0 %732 }
 0x2c7   : > { %4671 = vpow2.f32 %v562_v60  ;;  %v4571_v60 = vpack.c.bf16 %v4086_v59, %v4085_v58 }
 0x2d1   : > { %v4672_v61 = vpop.eup %4671 }
 0x2d2   : > { %4299 = vmatmul.mubr.msk.f32.vlgmr.msra.gmra.mrb[4].mxu1 %vm557_vm4, %v4672_v61  ;;  %v564_v62 = vsel %vm557_vm4, %v4672_v61, 0.0 }
 0x2d3   : > { %565 = vadd.xlane.f32.xlu1 %v564_v62  ;;  %4305 = vmatprep.mubr.msk.f32.mxu1 %vm4737_vm2, %v4736_v7 }
 0x2d4   : > { %4565 = vmatpush3.bf16.msk.msra.mxu1 %vm4994_vm7, %v4563_v5 }
 0x2d5   : > { %4308 = vmatprep.subr.mxu1 %v4736_v7 }
 0x2e4   : > { %730 = vrot.lane.b32.xlu1 %v4929_v42, %s4742_s23  ;;  %s4761_s23 = smov 76  }
 0x2e8   : > { %819 = vrot.lane.b32.xlu1 %v4929_v42, %s4743_s26  ;;  %s4752_s26 = smov 74  }
 0x2ec   : > { %982 = vrot.lane.b32.xlu1 %v4929_v42, %s4744_s27  ;;  %s4753_s27 = smov 32  }
 0x2f0   : > { %980 = vrot.lane.b32.xlu1 %v4929_v42, %s4745_s28  ;;  %s4754_s28 = smov 46  }
 0x360   : > { %v566_v9 = vpop.xlane.xlu1 %565 }
 0x361   : > { %4673 = vrcp.f32 %v566_v9 }
 0x364   : > { %v731_v10 = vpop.permute.xlu1 %730 }
 0x368   : > { %v820_v11 = vpop.permute.xlu1 %819 }
 0x369   : > { %4314 = vmatpush3.msra.mxu0 %v820_v11 }
 0x36a   : > { %4325 = vmatprep.subr.mxu0 %v4736_v7 }
 0x36b   : > { %v4674_v12 = vpop.eup %4673 }
 0x36c   : > { %v983_v27 = vpop.permute.xlu1 %982 }
 0x370   : > { %v981_v30 = vpop.permute.xlu1 %980 }
 0x3a5   : > { %v641_v13 = vpop.f32.mrb[4].mxu1 }
 0x3a6   : > { %v645_v14 = vmul.f32 %v4674_v12, %v641_v13  ;;  %v4300_v15 = vpop.f32.mrb[5].mxu1 }
 0x3a8   : > { %4306 = vmatmul.mubr.msk.f32.vlgmr.msra.gmra.mrb[6].mxu1 %vm482_vm3, %v645_v14 }
 0x3a9   : > { %4309 = vmatpush3.xpose.msk.msra.mxu1 %vm482_vm3, %v733_v16  ;;  %4310 = vmatprep.mubr.msk.f32.mxu1 %vm4737_vm2, %v4736_v7 }
 0x3aa   : > { %4566 = vmatprep.subr.bf16.mxu1 %v4741_v54 }
 0x3ac   : > { %4311 = vmatmul.mubr.msk.f32.vlgmr.msra.gmra.mrb[8].mxu1 %vm482_vm3, %v731_v10 }
 0x3ad   : > { %4322 = vmatprep.mubr.msk.f32.mxu1 %vm4737_vm2, %v4736_v7  ;;  %4569 = vmatpush3.bf16.msk.msra.mxu1 %vm4994_vm7, %v4567_v35 }
 0x3ae   : > { %4330 = vmatprep.subr.mxu1 %v4736_v7 }
 0x47b   : > { %v722_v18 = vpop.f32.mrb[6].mxu1 }
 0x47c   : > { %v726_v19 = vadd.f32 %v722_v18, %v646_v17  ;;  %v4307_v20 = vpop.f32.mrb[7].mxu1 }
 0x47e   : > { %727 = vst.msk [vmem:[%s5006_s9] sm:$0xff] %vm229_vm1, %v726_v19 }
 0x47f   : > { %v804_v21 = vpop.f32.mrb[8].mxu1 }
 0x480   : > { %v4312_v22 = vpop.f32.mrb[9].mxu1  ;;  %v808_v23 = vsel %vm557_vm4, %v804_v21, -inf }
 0x481   : > { %809 = vmax.xlane.f32.xlu0 %v808_v23  ;;  %v4092_v23 = vld [vmem:[%s5394_s2 + $0x30] sm:$0xff] }
 0x485   : > { %v896_v61 = vld [vmem:[%s5006_s9] sm:$0xff] }
 0x497   : > { %1069 = vrot.lane.b32.xlu0 %v4929_v42, %s4747_s16  ;;  %s4767_s16 = smov 6  }
 0x50e   : > { %v810_v24 = vpop.xlane.xlu0 %809 }
 0x50f   : > { %v811_v25 = vsub.f32 %v804_v21, %v810_v24  ;;  %v4093_v24 = vld [vmem:[%s5394_s2 + $0x38] sm:$0x3f] }
 0x511   : > { %v812_v26 = vmul.f32 1.442695, %v811_v25  ;;  %v4575_v25 = vpack.c.bf16 %v4093_v24, %v4092_v23 }
 0x512   : > { %v1070_v41 = vpop.permute.xlu0 %1069 }
 0x513   : > { %4675 = vpow2.f32 %v812_v26 }
 0x51d   : > { %v4676_v28 = vpop.eup %4675 }
 0x51e   : > { %4316 = vmatmul.mubr.msk.f32.vlgmr.msra.gmra.mrb[4].mxu0 %vm557_vm4, %v4676_v28  ;;  %v814_v29 = vsel %vm557_vm4, %v4676_v28, 0.0 }
 0x51f   : > { %4326 = vmatpush3.xpose.msk.msra.mxu0 %vm482_vm3, %v983_v27  ;;  %815 = vadd.xlane.f32.xlu1 %v814_v29 }
 0x520   : > { %4327 = vmatprep.mubr.msk.f32.mxu0 %vm4737_vm2, %v4736_v7  ;;  %4570 = vmatprep.subr.bf16.mxu0 %v4741_v54 }
 0x522   : > { %4328 = vmatmul.mubr.msk.f32.vlgmr.msra.gmra.mrb[6].mxu0 %vm482_vm3, %v981_v30 }
 0x523   : > { %4339 = vmatprep.mubr.msk.f32.mxu0 %vm4737_vm2, %v4736_v7  ;;  %4573 = vmatpush3.bf16.msk.msra.mxu0 %vm4994_vm7, %v4571_v60 }
 0x524   : > { %4347 = vmatprep.subr.mxu0 %v4736_v7 }
 0x530   : > { %1238 = vrot.lane.b32.xlu1 %v4931_v43, %s4748_s18 }
 0x5ac   : > { %v816_v36 = vpop.xlane.xlu1 %815 }
 0x5ad   : > { %4677 = vrcp.f32 %v816_v36 }
 0x5b0   : > { %v1239_v55 = vpop.permute.xlu1 %1238 }
 0x5b7   : > { %v4678_v37 = vpop.eup %4677 }
 0x5f1   : > { %v891_v38 = vpop.f32.mrb[4].mxu0 }
 0x5f2   : > { %v895_v39 = vmul.f32 %v4678_v37, %v891_v38  ;;  %v4317_v40 = vpop.f32.mrb[5].mxu0 }
 0x5f4   : > { %4323 = vmatmul.mubr.msk.f32.vlgmr.msra.gmra.mrb[10].mxu1 %vm482_vm3, %v895_v39 }
 0x5f5   : > { %4331 = vmatpush3.msra.mxu1 %v1070_v41  ;;  %v1054_v46 = vpop.f32.mrb[6].mxu0  ;;  %4332 = vmatprep.mubr.msk.f32.mxu1 %vm4737_vm2, %v4736_v7 }
 0x5f6   : > { %v4329_v47 = vpop.f32.mrb[7].mxu0  ;;  %v1058_v48 = vsel %vm557_vm4, %v1054_v46, -inf  ;;  %4342 = vmatprep.subr.mxu1 %v4736_v7 }
 0x5f7   : > { %1059 = vmax.xlane.f32.xlu0 %v1058_v48  ;;  %v4100_v47 = vld [vmem:[%s5394_s2 + $0x48] sm:$0x3f] }
 0x60d   : > { %1232 = vrot.lane.b32.xlu0 %v4929_v42, %s4749_s19 }
 0x611   : > { %1234 = vrot.lane.b32.xlu0 %v4931_v43, %s4749_s19  ;;  %s4769_s19 = smov 92  }
 0x684   : > { %v1060_v49 = vpop.xlane.xlu0 %1059 }
 0x685   : > { %v1061_v50 = vsub.f32 %v1054_v46, %v1060_v49  ;;  %v4099_v46 = vld [vmem:[%s5394_s2 + $0x40] sm:$0xff] }
 0x686   : > { %v4579_v48 = vpack.c.bf16 %v4100_v47, %v4099_v46 }
 0x687   : > { %v1062_v51 = vmul.f32 1.442695, %v1061_v50 }
 0x688   : > { %v1233_v52 = vpop.permute.xlu0 %1232 }
 0x689   : > { %4679 = vpow2.f32 %v1062_v51 }
 0x68c   : > { %v1235_v56 = vpop.permute.xlu0 %1234 }
 0x68d   : > { %v1237_v42 = vsel %vm1236_vm9, %v1233_v52, %v1235_v56 }
 0x693   : > { %v4680_v53 = vpop.eup %4679 }
 0x694   : > { %4333 = vmatmul.mubr.msk.f32.vlgmr.msra.gmra.mrb[12].mxu1 %vm557_vm4, %v4680_v53  ;;  %v1064_v57 = vsel %vm557_vm4, %v4680_v53, 0.0 }
 0x695   : > { %4343 = vmatpush3.xpose.msk.msra.mxu1 %vm482_vm3, %v1239_v55  ;;  %1065 = vadd.xlane.f32.xlu0 %v1064_v57 }
 0x696   : > { %4344 = vmatprep.mubr.msk.f32.mxu1 %vm4737_vm2, %v4736_v7  ;;  %4574 = vmatprep.subr.bf16.mxu1 %v4741_v54 }
 0x698   : > { %4345 = vmatmul.mubr.msk.f32.vlgmr.msra.gmra.mrb[14].mxu1 %vm482_vm3, %v1237_v42 }
 0x699   : > { %4356 = vmatprep.mubr.msk.f32.mxu1 %vm4737_vm2, %v4736_v7  ;;  %4577 = vmatpush3.bf16.msk.msra.mxu1 %vm4994_vm7, %v4575_v25 }
 0x69a   : > { %4364 = vmatprep.subr.mxu1 %v4736_v7 }
 0x6ab   : > { %1325 = vrot.lane.b32.xlu0 %v4931_v43, %s4750_s24  ;;  %s4762_s24 = smov 34  }
 0x6af   : > { %1486 = vrot.lane.b32.xlu0 %v4931_v43, %s4751_s25  ;;  %s4763_s25 = smov 48  }
 0x6c7   : > { %v972_v62 = vpop.f32.mrb[10].mxu1 }
 0x6c8   : > { %v976_v63 = vadd.f32 %v972_v62, %v896_v61  ;;  %v4324_v0 = vpop.f32.mrb[11].mxu1 }
 0x6ca   : > { %977 = vst.msk [vmem:[%s5006_s9] sm:$0xff] %vm229_vm1, %v976_v63 }
 0x6d1   : > { %v1146_v19 = vld [vmem:[%s5006_s9] sm:$0xff] }
 0x722   : > { %v1066_v1 = vpop.xlane.xlu0 %1065 }
 0x723   : > { %4681 = vrcp.f32 %v1066_v1 }
 0x726   : > { %v1326_v8 = vpop.permute.xlu0 %1325 }
 0x72a   : > { %v1487_v18 = vpop.permute.xlu0 %1486 }
 0x72d   : > { %v4682_v2 = vpop.eup %4681 }
 0x767   : > { %v1141_v3 = vpop.f32.mrb[12].mxu1 }
 0x768   : > { %v1145_v4 = vmul.f32 %v4682_v2, %v1141_v3  ;;  %v4334_v5 = vpop.f32.mrb[13].mxu1 }
 0x76a   : > { %4340 = vmatmul.mubr.msk.f32.vlgmr.msra.gmra.mrb[8].mxu0 %vm482_vm3, %v1145_v4 }
 0x76b   : > { %4348 = vmatpush3.msra.mxu0 %v1326_v8  ;;  %v1310_v9 = vpop.f32.mrb[14].mxu1  ;;  %4349 = vmatprep.mubr.msk.f32.mxu0 %vm4737_vm2, %v4736_v7  ;;  %v4106_v8 = vld [vmem:[%s5394_s2 + $0x50] sm:$0xff] }
 0x76c   : > { %v4346_v10 = vpop.f32.mrb[15].mxu1  ;;  %v1314_v11 = vsel %vm557_vm4, %v1310_v9, -inf  ;;  %4359 = vmatprep.subr.mxu0 %v4736_v7 }
 0x76d   : > { %1315 = vmax.xlane.f32.xlu1 %v1314_v11 }
 0x77e   : > { %1488 = vrot.lane.b32.xlu1 %v4931_v43, %s4752_s26  ;;  %s4764_s26 = smov 120  }
 0x7fa   : > { %v1316_v12 = vpop.xlane.xlu1 %1315 }
 0x7fb   : > { %v1317_v13 = vsub.f32 %v1310_v9, %v1316_v12  ;;  %v4107_v9 = vld [vmem:[%s5394_s2 + $0x58] sm:$0x3f] }
 0x7fc   : > { %v4583_v10 = vpack.c.bf16 %v4107_v9, %v4106_v8 }
 0x7fd   : > { %v1318_v14 = vmul.f32 1.442695, %v1317_v13 }
 0x7fe   : > { %v1489_v16 = vpop.permute.xlu1 %1488 }
 0x7ff   : > { %4683 = vpow2.f32 %v1318_v14 }
 0x809   : > { %v4684_v15 = vpop.eup %4683 }
 0x80a   : > { %4350 = vmatmul.mubr.msk.f32.vlgmr.msra.gmra.mrb[10].mxu0 %vm557_vm4, %v4684_v15  ;;  %v1320_v17 = vsel %vm557_vm4, %v4684_v15, 0.0 }
 0x80b   : > { %4360 = vmatpush3.xpose.msk.msra.mxu0 %vm482_vm3, %v1489_v16  ;;  %1321 = vadd.xlane.f32.xlu1 %v1320_v17 }
 0x80c   : > { %4361 = vmatprep.mubr.msk.f32.mxu0 %vm4737_vm2, %v4736_v7  ;;  %4578 = vmatprep.subr.bf16.mxu0 %v4741_v54 }
 0x80e   : > { %4362 = vmatmul.mubr.msk.f32.vlgmr.msra.gmra.mrb[12].mxu0 %vm482_vm3, %v1487_v18 }
 0x80f   : > { %4373 = vmatprep.mubr.msk.f32.mxu0 %vm4737_vm2, %v4736_v7  ;;  %4581 = vmatpush3.bf16.msk.msra.mxu0 %vm4994_vm7, %v4579_v48 }
 0x810   : > { %4381 = vmatprep.subr.mxu0 %v4736_v7 }
 0x81c   : > { %1738 = vrot.lane.b32.xlu1 %v4931_v43, %s4753_s27 }
 0x820   : > { %1736 = vrot.lane.b32.xlu1 %v4931_v43, %s4754_s28  ;;  %s4774_s28 = smov 64  }
 0x824   : > { %1994 = vrot.lane.b32.xlu1 %v4935_v44, %s4755_s29 }
 0x83d   : > { %v1222_v20 = vpop.f32.mrb[8].mxu0 }
 0x83e   : > { %v1226_v21 = vadd.f32 %v1222_v20, %v1146_v19  ;;  %v4341_v22 = vpop.f32.mrb[9].mxu0 }
 0x840   : > { %1227 = vst.msk [vmem:[%s5006_s9] sm:$0xff] %vm229_vm1, %v1226_v21 }
 0x847   : > { %v1402_v49 = vld [vmem:[%s5006_s9] sm:$0xff] }
 0x898   : > { %v1322_v26 = vpop.xlane.xlu1 %1321 }
 0x899   : > { %4685 = vrcp.f32 %v1322_v26 }
 0x89c   : > { %v1739_v38 = vpop.permute.xlu1 %1738 }
 0x8a0   : > { %v1737_v41 = vpop.permute.xlu1 %1736 }
 0x8a3   : > { %v4686_v27 = vpop.eup %4685 }
 0x8a4   : > { %v1995_v61 = vpop.permute.xlu1 %1994 }
 0x8dd   : > { %v1397_v28 = vpop.f32.mrb[10].mxu0 }
 0x8de   : > { %v1401_v29 = vmul.f32 %v4686_v27, %v1397_v28  ;;  %v4351_v30 = vpop.f32.mrb[11].mxu0 }
 0x8e0   : > { %4357 = vmatmul.mubr.msk.f32.vlgmr.msra.gmra.mrb[16].mxu1 %vm482_vm3, %v1401_v29 }
 0x8e1   : > { %v1560_v31 = vpop.f32.mrb[12].mxu0  ;;  %4366 = vmatprep.mubr.msk.f32.mxu1 %vm4737_vm2, %v4736_v7 }
 0x8e2   : > { %v4363_v32 = vpop.f32.mrb[13].mxu0  ;;  %v1564_v33 = vsel %vm557_vm4, %v1560_v31, -inf }
 0x8e3   : > { %1565 = vmax.xlane.f32.xlu0 %v1564_v33 }
 0x8f9   : > { %1575 = vrot.lane.b32.xlu0 %v4931_v43, %s4756_s8  ;;  %s4776_s8 = smov 8  }
 0x970   : > { %v1566_v34 = vpop.xlane.xlu0 %1565 }
 0x971   : > { %v1567_v35 = vsub.f32 %v1560_v31, %v1566_v34 }
 0x973   : > { %v1568_v36 = vmul.f32 1.442695, %v1567_v35  ;;  %v4113_v35 = vld [vmem:[%s5394_s2 + $0x60] sm:$0xff] }
 0x974   : > { %v1576_v37 = vpop.permute.xlu0 %1575 }
 0x975   : > { %4687 = vpow2.f32 %v1568_v36  ;;  %4365 = vmatpush3.msra.mxu1 %v1576_v37  ;;  %v4114_v36 = vld [vmem:[%s5394_s2 + $0x68] sm:$0x3f] }
 0x976   : > { %4376 = vmatprep.subr.mxu1 %v4736_v7  ;;  %v4587_v37 = vpack.c.bf16 %v4114_v36, %v4113_v35 }
 0x97f   : > { %v4688_v39 = vpop.eup %4687 }
 0x980   : > { %4367 = vmatmul.mubr.msk.f32.vlgmr.msra.gmra.mrb[18].mxu1 %vm557_vm4, %v4688_v39  ;;  %v1570_v40 = vsel %vm557_vm4, %v4688_v39, 0.0 }
 0x981   : > { %4377 = vmatpush3.xpose.msk.msra.mxu1 %vm482_vm3, %v1739_v38  ;;  %1571 = vadd.xlane.f32.xlu0 %v1570_v40 }
 0x982   : > { %4378 = vmatprep.mubr.msk.f32.mxu1 %vm4737_vm2, %v4736_v7  ;;  %4582 = vmatprep.subr.bf16.mxu1 %v4741_v54 }
 0x984   : > { %4379 = vmatmul.mubr.msk.f32.vlgmr.msra.gmra.mrb[20].mxu1 %vm482_vm3, %v1737_v41 }
 0x985   : > { %4390 = vmatprep.mubr.msk.f32.mxu1 %vm4737_vm2, %v4736_v7  ;;  %4585 = vmatpush3.bf16.msk.msra.mxu1 %vm4994_vm7, %v4583_v10 }
 0x986   : > { %4398 = vmatprep.subr.mxu1 %v4736_v7 }
 0x997   : > { %1825 = vrot.lane.b32.xlu0 %v4931_v43, %s4757_s12  ;;  %s4777_s12 = smov 108  }
 0x99b   : > { %1988 = vrot.lane.b32.xlu0 %v4931_v43, %s4758_s13 }
 0x9b3   : > { %v1478_v50 = vpop.f32.mrb[16].mxu1 }
 0x9b4   : > { %v1482_v51 = vadd.f32 %v1478_v50, %v1402_v49  ;;  %v4358_v52 = vpop.f32.mrb[17].mxu1 }
 0x9b6   : > { %1483 = vst.msk [vmem:[%s5006_s9] sm:$0xff] %vm229_vm1, %v1482_v51 }
 0x9bd   : > { %v1652_v11 = vld [vmem:[%s5006_s9] sm:$0xff] }
 0xa0e   : > { %v1572_v53 = vpop.xlane.xlu0 %1571 }
 0xa0f   : > { %4689 = vrcp.f32 %v1572_v53 }
 0xa12   : > { %v1826_v58 = vpop.permute.xlu0 %1825 }
 0xa16   : > { %v1989_v4 = vpop.permute.xlu0 %1988 }
 0xa19   : > { %v4690_v55 = vpop.eup %4689 }
 0xa53   : > { %v1647_v56 = vpop.f32.mrb[18].mxu1 }
 0xa54   : > { %v1651_v57 = vmul.f32 %v4690_v55, %v1647_v56  ;;  %v4368_v42 = vpop.f32.mrb[19].mxu1 }
 0xa56   : > { %4374 = vmatmul.mubr.msk.f32.vlgmr.msra.gmra.mrb[14].mxu0 %vm482_vm3, %v1651_v57 }
 0xa57   : > { %4382 = vmatpush3.msra.mxu0 %v1826_v58  ;;  %v1810_v59 = vpop.f32.mrb[20].mxu1  ;;  %4383 = vmatprep.mubr.msk.f32.mxu0 %vm4737_vm2, %v4736_v7  ;;  %v4120_v58 = vld [vmem:[%s5394_s2 + $0x70] sm:$0xff] }
 0xa58   : > { %v4380_v43 = vpop.f32.mrb[21].mxu1  ;;  %v1814_v60 = vsel %vm557_vm4, %v1810_v59, -inf  ;;  %4393 = vmatprep.subr.mxu0 %v4736_v7 }
 0xa59   : > { %1815 = vmax.xlane.f32.xlu1 %v1814_v60 }
 0xa6a   : > { %1990 = vrot.lane.b32.xlu1 %v4935_v44, %s4758_s13  ;;  %s4778_s13 = smov 94  }
 0xae6   : > { %v1816_v62 = vpop.xlane.xlu1 %1815 }
 0xae7   : > { %v1817_v63 = vsub.f32 %v1810_v59, %v1816_v62  ;;  %v4121_v59 = vld [vmem:[%s5394_s2 + $0x78] sm:$0x3f] }
 0xae8   : > { %v4591_v43 = vpack.c.bf16 %v4121_v59, %v4120_v58 }
 0xae9   : > { %v1818_v0 = vmul.f32 1.442695, %v1817_v63 }
 0xaea   : > { %v1991_v2 = vpop.permute.xlu1 %1990 }
 0xaeb   : > { %4691 = vpow2.f32 %v1818_v0  ;;  %v1993_v5 = vsel %vm1992_vm10, %v1989_v4, %v1991_v2 }
 0xaf5   : > { %v4692_v1 = vpop.eup %4691 }
 0xaf6   : > { %4384 = vmatmul.mubr.msk.f32.vlgmr.msra.gmra.mrb[16].mxu0 %vm557_vm4, %v4692_v1  ;;  %v1820_v3 = vsel %vm557_vm4, %v4692_v1, 0.0 }
 0xaf7   : > { %4394 = vmatpush3.xpose.msk.msra.mxu0 %vm482_vm3, %v1995_v61  ;;  %1821 = vadd.xlane.f32.xlu0 %v1820_v3 }
 0xaf8   : > { %4395 = vmatprep.mubr.msk.f32.mxu0 %vm4737_vm2, %v4736_v7  ;;  %4586 = vmatprep.subr.bf16.mxu0 %v4741_v54 }
 0xafa   : > { %4396 = vmatmul.mubr.msk.f32.vlgmr.msra.gmra.mrb[18].mxu0 %vm482_vm3, %v1993_v5 }
 0xafb   : > { %4407 = vmatprep.mubr.msk.f32.mxu0 %vm4737_vm2, %v4736_v7  ;;  %4589 = vmatpush3.bf16.msk.msra.mxu0 %vm4994_vm7, %v4587_v37 }
 0xafc   : > { %4415 = vmatprep.subr.mxu0 %v4736_v7 }
 0xb0d   : > { %2081 = vrot.lane.b32.xlu0 %v4935_v44, %s4759_s21  ;;  %s4771_s21 = smov 36  }
 0xb11   : > { %2242 = vrot.lane.b32.xlu0 %v4935_v44, %s4760_s22  ;;  %s4772_s22 = smov 50  }
 0xb29   : > { %v1728_v12 = vpop.f32.mrb[14].mxu0 }
 0xb2a   : > { %v1732_v13 = vadd.f32 %v1728_v12, %v1652_v11  ;;  %v4375_v14 = vpop.f32.mrb[15].mxu0 }
 0xb2c   : > { %1733 = vst.msk [vmem:[%s5006_s9] sm:$0xff] %vm229_vm1, %v1732_v13 }
 0xb33   : > { %v1902_v31 = vld [vmem:[%s5006_s9] sm:$0xff] }
 0xb84   : > { %v1822_v15 = vpop.xlane.xlu0 %1821 }
 0xb85   : > { %4693 = vrcp.f32 %v1822_v15 }
 0xb88   : > { %v2082_v20 = vpop.permute.xlu0 %2081 }
 0xb8c   : > { %v2243_v30 = vpop.permute.xlu0 %2242 }
 0xb8f   : > { %v4694_v16 = vpop.eup %4693 }
 0xbc9   : > { %v1897_v17 = vpop.f32.mrb[16].mxu0 }
 0xbca   : > { %v1901_v18 = vmul.f32 %v4694_v16, %v1897_v17  ;;  %v4385_v19 = vpop.f32.mrb[17].mxu0 }
 0xbcb   : > { %v4127_v19 = vld [vmem:[%s5394_s2 + $0x80] sm:$0xff] }
 0xbcc   : > { %4391 = vmatmul.mubr.msk.f32.vlgmr.msra.gmra.mrb[22].mxu1 %vm482_vm3, %v1901_v18 }
 0xbcd   : > { %4399 = vmatpush3.msra.mxu1 %v2082_v20  ;;  %v2066_v21 = vpop.f32.mrb[18].mxu0  ;;  %4400 = vmatprep.mubr.msk.f32.mxu1 %vm4737_vm2, %v4736_v7  ;;  %v4128_v20 = vld [vmem:[%s5394_s2 + $0x88] sm:$0x3f] }
 0xbce   : > { %v4397_v22 = vpop.f32.mrb[19].mxu0  ;;  %v2070_v23 = vsel %vm557_vm4, %v2066_v21, -inf  ;;  %4410 = vmatprep.subr.mxu1 %v4736_v7 }
 0xbcf   : > { %2071 = vmax.xlane.f32.xlu1 %v2070_v23 }
 0xbe0   : > { %2244 = vrot.lane.b32.xlu1 %v4935_v44, %s4761_s23  ;;  %s4773_s23 = smov 122  }
 0xc5c   : > { %v2072_v24 = vpop.xlane.xlu1 %2071 }
 0xc5d   : > { %v2073_v25 = vsub.f32 %v2066_v21, %v2072_v24  ;;  %v4595_v21 = vpack.c.bf16 %v4128_v20, %v4127_v19 }
 0xc5f   : > { %v2074_v26 = vmul.f32 1.442695, %v2073_v25 }
 0xc60   : > { %v2245_v28 = vpop.permute.xlu1 %2244 }
 0xc61   : > { %4695 = vpow2.f32 %v2074_v26 }
 0xc6b   : > { %v4696_v27 = vpop.eup %4695 }
 0xc6c   : > { %4401 = vmatmul.mubr.msk.f32.vlgmr.msra.gmra.mrb[24].mxu1 %vm557_vm4, %v4696_v27  ;;  %v2076_v29 = vsel %vm557_vm4, %v4696_v27, 0.0 }
 0xc6d   : > { %4411 = vmatpush3.xpose.msk.msra.mxu1 %vm482_vm3, %v2245_v28  ;;  %2077 = vadd.xlane.f32.xlu1 %v2076_v29 }
 0xc6e   : > { %4412 = vmatprep.mubr.msk.f32.mxu1 %vm4737_vm2, %v4736_v7  ;;  %4590 = vmatprep.subr.bf16.mxu1 %v4741_v54 }
 0xc70   : > { %4413 = vmatmul.mubr.msk.f32.vlgmr.msra.gmra.mrb[26].mxu1 %vm482_vm3, %v2243_v30 }
 0xc71   : > { %4424 = vmatprep.mubr.msk.f32.mxu1 %vm4737_vm2, %v4736_v7  ;;  %4593 = vmatpush3.bf16.msk.msra.mxu1 %vm4994_vm7, %v4591_v43 }
 0xc72   : > { %4432 = vmatprep.subr.mxu1 %v4736_v7 }
 0xc7e   : > { %2494 = vrot.lane.b32.xlu1 %v4935_v44, %s4762_s24 }
 0xc82   : > { %2492 = vrot.lane.b32.xlu1 %v4935_v44, %s4763_s25 }
 0xc86   : > { %2750 = vrot.lane.b32.xlu1 %v4937_v45, %s4764_s26 }
 0xc9f   : > { %v1978_v32 = vpop.f32.mrb[22].mxu1 }
 0xca0   : > { %v1982_v33 = vadd.f32 %v1978_v32, %v1902_v31  ;;  %v4392_v34 = vpop.f32.mrb[23].mxu1 }
 0xca2   : > { %1983 = vst.msk [vmem:[%s5006_s9] sm:$0xff] %vm229_vm1, %v1982_v33 }
 0xca9   : > { %v2158_v60 = vld [vmem:[%s5006_s9] sm:$0xff] }
 0xcfa   : > { %v2078_v38 = vpop.xlane.xlu1 %2077 }
 0xcfb   : > { %4697 = vrcp.f32 %v2078_v38 }
 0xcfe   : > { %v2495_v55 = vpop.permute.xlu1 %2494 }
 0xd02   : > { %v2493_v42 = vpop.permute.xlu1 %2492 }
 0xd05   : > { %v4698_v39 = vpop.eup %4697 }
 0xd06   : > { %v2751_v10 = vpop.permute.xlu1 %2750 }
 0xd3f   : > { %v2153_v40 = vpop.f32.mrb[24].mxu1 }
 0xd40   : > { %v2157_v41 = vmul.f32 %v4698_v39, %v2153_v40  ;;  %v4402_v46 = vpop.f32.mrb[25].mxu1 }
 0xd41   : > { %v5269_v46 = vld [vmem:[#allocation2 + $0x20] sm:$0xff] }
 0xd42   : > { %4408 = vmatmul.mubr.msk.f32.vlgmr.msra.gmra.mrb[20].mxu0 %vm482_vm3, %v2157_v41 }
 0xd43   : > { %v2316_v47 = vpop.f32.mrb[26].mxu1  ;;  %4417 = vmatprep.mubr.msk.f32.mxu0 %vm4737_vm2, %v4736_v7 }
 0xd44   : > { %v4414_v48 = vpop.f32.mrb[27].mxu1  ;;  %v2320_v49 = vsel %vm557_vm4, %v2316_v47, -inf }
 0xd45   : > { %2321 = vmax.xlane.f32.xlu0 %v2320_v49 }
 0xd5b   : > { %2331 = vrot.lane.b32.xlu0 %v4935_v44, %s4765_s5 }
 0xdd2   : > { %v2322_v50 = vpop.xlane.xlu0 %2321 }
 0xdd3   : > { %v2323_v51 = vsub.f32 %v2316_v47, %v2322_v50 }
 0xdd5   : > { %v2324_v52 = vmul.f32 1.442695, %v2323_v51  ;;  %v4134_v51 = vld [vmem:[%s5394_s2 + $0x90] sm:$0xff] }
 0xdd6   : > { %v2332_v53 = vpop.permute.xlu0 %2331 }
 0xdd7   : > { %4699 = vpow2.f32 %v2324_v52  ;;  %4416 = vmatpush3.msra.mxu0 %v2332_v53  ;;  %v4135_v52 = vld [vmem:[%s5394_s2 + $0x98] sm:$0x3f] }
 0xdd8   : > { %4427 = vmatprep.subr.mxu0 %v4736_v7 }
 0xde1   : > { %v4700_v56 = vpop.eup %4699 }
 0xde2   : > { %4418 = vmatmul.mubr.msk.f32.vlgmr.msra.gmra.mrb[22].mxu0 %vm557_vm4, %v4700_v56  ;;  %v2326_v57 = vsel %vm557_vm4, %v4700_v56, 0.0 }
 0xde3   : > { %4428 = vmatpush3.xpose.msk.msra.mxu0 %vm482_vm3, %v2495_v55  ;;  %2327 = vadd.xlane.f32.xlu0 %v2326_v57 }
 0xde4   : > { %4429 = vmatprep.mubr.msk.f32.mxu0 %vm4737_vm2, %v4736_v7  ;;  %4594 = vmatprep.subr.bf16.mxu0 %v4741_v54 }
 0xde6   : > { %4430 = vmatmul.mubr.msk.f32.vlgmr.msra.gmra.mrb[24].mxu0 %vm482_vm3, %v2493_v42 }
 0xde7   : > { %4441 = vmatprep.mubr.msk.f32.mxu0 %vm4737_vm2, %v4736_v7  ;;  %4597 = vmatpush3.bf16.msk.msra.mxu0 %vm4994_vm7, %v4595_v21 }
 0xde8   : > { %4449 = vmatprep.subr.mxu0 %v4736_v7 }
 0xdf9   : > { %2581 = vrot.lane.b32.xlu0 %v4935_v44, %s4766_s11 }
 0xdfd   : > { %2744 = vrot.lane.b32.xlu0 %v4935_v44, %s4767_s16 }
 0xe15   : > { %v2234_v61 = vpop.f32.mrb[20].mxu0 }
 0xe16   : > { %v2238_v62 = vadd.f32 %v2234_v61, %v2158_v60  ;;  %v4409_v63 = vpop.f32.mrb[21].mxu0  ;;  %v4727_v60 = vld [vmem:[#allocation2 + $0x18] sm:$0xff] }
 0xe18   : > { %2239 = vst.msk [vmem:[%s5006_s9] sm:$0xff] %vm229_vm1, %v2238_v62 }
 0xe1f   : > { %v2408_v22 = vld [vmem:[%s5006_s9] sm:$0xff] }
 0xe70   : > { %v2328_v0 = vpop.xlane.xlu0 %2327 }
 0xe71   : > { %4701 = vrcp.f32 %v2328_v0 }
 0xe74   : > { %v2582_v5 = vpop.permute.xlu0 %2581 }
 0xe78   : > { %v2745_v17 = vpop.permute.xlu0 %2744 }
 0xe7b   : > { %v4702_v1 = vpop.eup %4701 }
 0xeb5   : > { %v2403_v2 = vpop.f32.mrb[22].mxu0 }
 0xeb6   : > { %v2407_v3 = vmul.f32 %v4702_v1, %v2403_v2  ;;  %v4419_v4 = vpop.f32.mrb[23].mxu0 }
 0xeb8   : > { %4425 = vmatmul.mubr.msk.f32.vlgmr.msra.gmra.mrb[28].mxu1 %vm482_vm3, %v2407_v3 }
 0xeb9   : > { %4433 = vmatpush3.msra.mxu1 %v2582_v5  ;;  %v2566_v8 = vpop.f32.mrb[24].mxu0  ;;  %4434 = vmatprep.mubr.msk.f32.mxu1 %vm4737_vm2, %v4736_v7  ;;  %v4141_v5 = vld [vmem:[%s5394_s2 + $0xa0] sm:$0xff] }
 0xeba   : > { %v4431_v44 = vpop.f32.mrb[25].mxu0  ;;  %v2570_v9 = vsel %vm557_vm4, %v2566_v8, -inf  ;;  %4444 = vmatprep.subr.mxu1 %v4736_v7 }
 0xebb   : > { %2571 = vmax.xlane.f32.xlu1 %v2570_v9  ;;  %v3496_v9 = vld [vmem:[#allocation2 + $0x18] sm:$0xff] }
 0xecc   : > { %2746 = vrot.lane.b32.xlu1 %v4937_v45, %s4767_s16 }
 0xf48   : > { %v2572_v11 = vpop.xlane.xlu1 %2571 }
 0xf49   : > { %v2573_v12 = vsub.f32 %v2566_v8, %v2572_v11  ;;  %v4142_v8 = vld [vmem:[%s5394_s2 + $0xa8] sm:$0x3f] }
 0xf4a   : > { %v4603_v44 = vpack.c.bf16 %v4142_v8, %v4141_v5 }
 0xf4b   : > { %v2574_v13 = vmul.f32 1.442695, %v2573_v12 }
 0xf4c   : > { %v2747_v15 = vpop.permute.xlu1 %2746 }
 0xf4d   : > { %4703 = vpow2.f32 %v2574_v13  ;;  %v2749_v18 = vsel %vm2748_vm11, %v2745_v17, %v2747_v15 }
 0xf57   : > { %v4704_v14 = vpop.eup %4703 }
 0xf58   : > { %4435 = vmatmul.mubr.msk.f32.vlgmr.msra.gmra.mrb[30].mxu1 %vm557_vm4, %v4704_v14  ;;  %v2576_v16 = vsel %vm557_vm4, %v4704_v14, 0.0 }
 0xf59   : > { %4445 = vmatpush3.xpose.msk.msra.mxu1 %vm482_vm3, %v2751_v10  ;;  %2577 = vadd.xlane.f32.xlu0 %v2576_v16 }
 0xf5a   : > { %4446 = vmatprep.mubr.msk.f32.mxu1 %vm4737_vm2, %v4736_v7  ;;  %4598 = vmatprep.subr.bf16.mxu1 %v4741_v54 }
 0xf5c   : > { %4447 = vmatmul.mubr.msk.f32.vlgmr.msra.gmra.mrb[32].mxu1 %vm482_vm3, %v2749_v18 }
 0xf5d   : > { %4458 = vmatprep.mubr.msk.f32.mxu1 %vm4737_vm2, %v4736_v7 }
 0xf6f   : > { %2837 = vrot.lane.b32.xlu0 %v4937_v45, %s4768_s17 }
 0xf73   : > { %2998 = vrot.lane.b32.xlu0 %v4937_v45, %s4769_s19 }
 0xf8b   : > { %v2484_v23 = vpop.f32.mrb[28].mxu1 }
 0xf8c   : > { %v2488_v24 = vadd.f32 %v2484_v23, %v2408_v22  ;;  %v4426_v25 = vpop.f32.mrb[29].mxu1 }
 0xf8e   : > { %2489 = vst.msk [vmem:[%s5006_s9] sm:$0xff] %vm229_vm1, %v2488_v24 }
 0xf95   : > { %v2658_v47 = vld [vmem:[%s5006_s9] sm:$0xff] }
 0xfe6   : > { %v2578_v26 = vpop.xlane.xlu0 %2577 }
 0xfe7   : > { %4705 = vrcp.f32 %v2578_v26 }
 0xfea   : > { %v2838_v31 = vpop.permute.xlu0 %2837 }
 0xfee   : > { %v2999_v41 = vpop.permute.xlu0 %2998 }
 0xff1   : > { %v4706_v27 = vpop.eup %4705 }
0x102b   : > { %v2653_v28 = vpop.f32.mrb[30].mxu1 }
0x102c   : > { %v2657_v29 = vmul.f32 %v4706_v27, %v2653_v28  ;;  %v4436_v30 = vpop.f32.mrb[31].mxu1 }
0x102e   : > { %4442 = vmatmul.mubr.msk.f32.vlgmr.msra.gmra.mrb[26].mxu0 %vm482_vm3, %v2657_v29 }
0x102f   : > { %4450 = vmatpush3.msra.mxu0 %v2838_v31  ;;  %v2822_v32 = vpop.f32.mrb[32].mxu1  ;;  %4451 = vmatprep.mubr.msk.f32.mxu0 %vm4737_vm2, %v4736_v7 }
0x1030   : > { %v4448_v33 = vpop.f32.mrb[33].mxu1  ;;  %v2826_v34 = vsel %vm557_vm4, %v2822_v32, -inf  ;;  %4461 = vmatprep.subr.mxu0 %v4736_v7 }
0x1031   : > { %2827 = vmax.xlane.f32.xlu1 %v2826_v34  ;;  %v4149_v33 = vld [vmem:[%s5394_s2 + $0xb8] sm:$0x3f] }
0x1042   : > { %3000 = vrot.lane.b32.xlu1 %v4937_v45, %s4770_s20 }
0x10be   : > { %v2828_v35 = vpop.xlane.xlu1 %2827 }
0x10bf   : > { %v2829_v36 = vsub.f32 %v2822_v32, %v2828_v35  ;;  %v4148_v32 = vld [vmem:[%s5394_s2 + $0xb0] sm:$0xff] }
0x10c0   : > { %v4607_v34 = vpack.c.bf16 %v4149_v33, %v4148_v32 }
0x10c1   : > { %v2830_v37 = vmul.f32 1.442695, %v2829_v36 }
0x10c2   : > { %v3001_v39 = vpop.permute.xlu1 %3000 }
0x10c3   : > { %4707 = vpow2.f32 %v2830_v37 }
0x10cd   : > { %v4708_v38 = vpop.eup %4707 }
0x10ce   : > { %4452 = vmatmul.mubr.msk.f32.vlgmr.msra.gmra.mrb[28].mxu0 %vm557_vm4, %v4708_v38  ;;  %v2832_v40 = vsel %vm557_vm4, %v4708_v38, 0.0 }
0x10cf   : > { %4462 = vmatpush3.xpose.msk.msra.mxu0 %vm482_vm3, %v3001_v39  ;;  %2833 = vadd.xlane.f32.xlu1 %v2832_v40 }
0x10d0   : > { %4463 = vmatprep.mubr.msk.f32.mxu0 %vm4737_vm2, %v4736_v7  ;;  %4602 = vmatprep.subr.bf16.mxu0 %v4741_v54 }
0x10d2   : > { %4464 = vmatmul.mubr.msk.f32.vlgmr.msra.gmra.mrb[30].mxu0 %vm482_vm3, %v2999_v41 }
0x10d3   : > { %4475 = vmatprep.mubr.msk.f32.mxu0 %vm4737_vm2, %v4736_v7  ;;  %4605 = vmatpush3.bf16.msk.msra.mxu0 %vm4994_vm7, %v4603_v44 }
0x10d4   : > { %4483 = vmatprep.subr.mxu0 %v4736_v7 }
0x10e0   : > { %3250 = vrot.lane.b32.xlu1 %v4937_v45, %s4771_s21 }
0x10e4   : > { %3248 = vrot.lane.b32.xlu1 %v4937_v45, %s4772_s22  ;;  %v4599_v45 = vpack.c.bf16 %v4135_v52, %v4134_v51  ;;  %s4780_s22 = smov 66  }
0x10e6   : > { %4601 = vmatpush3.bf16.msk.msra.mxu1 %vm4994_vm7, %v4599_v45 }
0x10e7   : > { %4466 = vmatprep.subr.mxu1 %v4736_v7 }
0x10e8   : > { %3505 = vrot.lane.b32.xlu1 %v5269_v46, %s4773_s23 }
0x1101   : > { %v2734_v48 = vpop.f32.mrb[26].mxu0 }
0x1102   : > { %v2738_v49 = vadd.f32 %v2734_v48, %v2658_v47  ;;  %v4443_v50 = vpop.f32.mrb[27].mxu0 }
0x1104   : > { %2739 = vst.msk [vmem:[%s5006_s9] sm:$0xff] %vm229_vm1, %v2738_v49 }
0x110b   : > { %v2914_v10 = vld [vmem:[%s5006_s9] sm:$0xff] }
0x115c   : > { %v2834_v53 = vpop.xlane.xlu1 %2833 }
0x115d   : > { %4709 = vrcp.f32 %v2834_v53 }
0x1160   : > { %v3251_v1 = vpop.permute.xlu1 %3250 }
0x1164   : > { %v3249_v4 = vpop.permute.xlu1 %3248 }
0x1167   : > { %v4710_v55 = vpop.eup %4709 }
0x1168   : > { %v3506_v23 = vpop.permute.xlu1 %3505 }
0x11a1   : > { %v2909_v56 = vpop.f32.mrb[28].mxu0 }
0x11a2   : > { %v2913_v57 = vmul.f32 %v4710_v55, %v2909_v56  ;;  %v4453_v42 = vpop.f32.mrb[29].mxu0 }
0x11a4   : > { %4459 = vmatmul.mubr.msk.f32.vlgmr.msra.gmra.mrb[34].mxu1 %vm482_vm3, %v2913_v57 }
0x11a5   : > { %v3072_v58 = vpop.f32.mrb[30].mxu0  ;;  %4468 = vmatprep.mubr.msk.f32.mxu1 %vm4737_vm2, %v4736_v7 }
0x11a6   : > { %v4465_v59 = vpop.f32.mrb[31].mxu0  ;;  %v3076_v43 = vsel %vm557_vm4, %v3072_v58, -inf }
0x11a7   : > { %3077 = vmax.xlane.f32.xlu0 %v3076_v43 }
0x11bd   : > { %3087 = vrot.lane.b32.xlu0 %v4727_v60, %s4774_s28 }
0x1234   : > { %v3078_v61 = vpop.xlane.xlu0 %3077 }
0x1235   : > { %v3079_v62 = vsub.f32 %v3072_v58, %v3078_v61 }
0x1237   : > { %v3080_v63 = vmul.f32 1.442695, %v3079_v62  ;;  %v4155_v62 = vld [vmem:[%s5394_s2 + $0xc0] sm:$0xff] }
0x1238   : > { %v3088_v0 = vpop.permute.xlu0 %3087 }
0x1239   : > { %4711 = vpow2.f32 %v3080_v63  ;;  %4467 = vmatpush3.msra.mxu1 %v3088_v0 }
0x123a   : > { %4478 = vmatprep.subr.mxu1 %v4736_v7 }
0x1243   : > { %v4712_v2 = vpop.eup %4711 }
0x1244   : > { %4469 = vmatmul.mubr.msk.f32.vlgmr.msra.gmra.mrb[36].mxu1 %vm557_vm4, %v4712_v2  ;;  %v3082_v3 = vsel %vm557_vm4, %v4712_v2, 0.0 }
0x1245   : > { %4479 = vmatpush3.xpose.msk.msra.mxu1 %vm482_vm3, %v3251_v1  ;;  %3083 = vadd.xlane.f32.xlu0 %v3082_v3 }
0x1246   : > { %4480 = vmatprep.mubr.msk.f32.mxu1 %vm4737_vm2, %v4736_v7  ;;  %4606 = vmatprep.subr.bf16.mxu1 %v4741_v54 }
0x1248   : > { %4481 = vmatmul.mubr.msk.f32.vlgmr.msra.gmra.mrb[38].mxu1 %vm482_vm3, %v3249_v4 }
0x1249   : > { %4492 = vmatprep.mubr.msk.f32.mxu1 %vm4737_vm2, %v4736_v7  ;;  %4609 = vmatpush3.bf16.msk.msra.mxu1 %vm4994_vm7, %v4607_v34 }
0x124a   : > { %4500 = vmatprep.subr.mxu1 %v4736_v7 }
0x125b   : > { %3337 = vrot.lane.b32.xlu0 %v4727_v60, %s4775_s7 }
0x125f   : > { %3500 = vrot.lane.b32.xlu0 %v3496_v9, %s4776_s8 }
0x1277   : > { %v2990_v11 = vpop.f32.mrb[34].mxu1 }
0x1278   : > { %v2994_v12 = vadd.f32 %v2990_v11, %v2914_v10  ;;  %v4460_v13 = vpop.f32.mrb[35].mxu1 }
0x127a   : > { %2995 = vst.msk [vmem:[%s5006_s9] sm:$0xff] %vm229_vm1, %v2994_v12 }
0x1281   : > { %v3164_v35 = vld [vmem:[%s5006_s9] sm:$0xff] }
0x12d2   : > { %v3084_v14 = vpop.xlane.xlu0 %3083 }
0x12d3   : > { %4713 = vrcp.f32 %v3084_v14 }
0x12d6   : > { %v3338_v19 = vpop.permute.xlu0 %3337 }
0x12da   : > { %v3501_v30 = vpop.permute.xlu0 %3500 }
0x12dd   : > { %v4714_v15 = vpop.eup %4713 }
0x1317   : > { %v3159_v16 = vpop.f32.mrb[36].mxu1 }
0x1318   : > { %v3163_v17 = vmul.f32 %v4714_v15, %v3159_v16  ;;  %v4470_v18 = vpop.f32.mrb[37].mxu1 }
0x1319   : > { %v4163_v18 = vld [vmem:[%s5394_s2 + $0xd8] sm:$0x3f] }
0x131a   : > { %4476 = vmatmul.mubr.msk.f32.vlgmr.msra.gmra.mrb[32].mxu0 %vm482_vm3, %v3163_v17 }
0x131b   : > { %4484 = vmatpush3.msra.mxu0 %v3338_v19  ;;  %v3322_v20 = vpop.f32.mrb[38].mxu1  ;;  %4485 = vmatprep.mubr.msk.f32.mxu0 %vm4737_vm2, %v4736_v7 }
0x131c   : > { %v4482_v21 = vpop.f32.mrb[39].mxu1  ;;  %v3326_v22 = vsel %vm557_vm4, %v3322_v20, -inf  ;;  %4495 = vmatprep.subr.mxu0 %v4736_v7 }
0x131d   : > { %3327 = vmax.xlane.f32.xlu1 %v3326_v22 }
0x132e   : > { %3502 = vrot.lane.b32.xlu1 %v5269_v46, %s4776_s8 }
0x13aa   : > { %v3328_v24 = vpop.xlane.xlu1 %3327 }
0x13ab   : > { %v3329_v25 = vsub.f32 %v3322_v20, %v3328_v24 }
0x13ad   : > { %v3330_v26 = vmul.f32 1.442695, %v3329_v25 }
0x13ae   : > { %v3503_v28 = vpop.permute.xlu1 %3502 }
0x13af   : > { %4715 = vpow2.f32 %v3330_v26  ;;  %v3504_v31 = vsel %vm557_vm4, %v3501_v30, %v3503_v28 }
0x13b9   : > { %v4716_v27 = vpop.eup %4715 }
0x13ba   : > { %4486 = vmatmul.mubr.msk.f32.vlgmr.msra.gmra.mrb[34].mxu0 %vm557_vm4, %v4716_v27  ;;  %v3332_v29 = vsel %vm557_vm4, %v4716_v27, 0.0 }
0x13bb   : > { %4496 = vmatpush3.xpose.msk.msra.mxu0 %vm482_vm3, %v3506_v23  ;;  %3333 = vadd.xlane.f32.xlu0 %v3332_v29 }
0x13bc   : > { %4497 = vmatprep.mubr.msk.f32.mxu0 %vm4737_vm2, %v4736_v7  ;;  %4610 = vmatprep.subr.bf16.mxu0 %v4741_v54 }
0x13be   : > { %4498 = vmatmul.mubr.msk.f32.vlgmr.msra.gmra.mrb[36].mxu0 %vm482_vm3, %v3504_v31 }
0x13bf   : > { %4509 = vmatprep.mubr.msk.f32.mxu0 %vm4737_vm2, %v4736_v7 }
0x13d1   : > { %3592 = vrot.lane.b32.xlu0 %v5269_v46, %s4777_s12 }
0x13d5   : > { %3753 = vrot.lane.b32.xlu0 %v5269_v46, %s4778_s13 }
0x13ed   : > { %v3240_v36 = vpop.f32.mrb[32].mxu0 }
0x13ee   : > { %v3244_v37 = vadd.f32 %v3240_v36, %v3164_v35  ;;  %v4477_v38 = vpop.f32.mrb[33].mxu0 }
0x13f0   : > { %3245 = vst.msk [vmem:[%s5006_s9] sm:$0xff] %vm229_vm1, %v3244_v37 }
0x13f7   : > { %v3414_v59 = vld [vmem:[%s5006_s9] sm:$0xff] }
0x1448   : > { %v3334_v39 = vpop.xlane.xlu0 %3333 }
0x1449   : > { %4717 = vrcp.f32 %v3334_v39 }
0x144c   : > { %v3593_v49 = vpop.permute.xlu0 %3592 }
0x1450   : > { %v3754_v58 = vpop.permute.xlu0 %3753 }
0x1453   : > { %v4718_v40 = vpop.eup %4717 }
0x148d   : > { %v3409_v41 = vpop.f32.mrb[34].mxu0 }
0x148e   : > { %v3413_v47 = vmul.f32 %v4718_v40, %v3409_v41  ;;  %v4487_v48 = vpop.f32.mrb[35].mxu0 }
0x1490   : > { %4493 = vmatmul.mubr.msk.f32.vlgmr.msra.gmra.mrb[40].mxu1 %vm482_vm3, %v3413_v47 }
0x1491   : > { %4501 = vmatpush3.msra.mxu1 %v3593_v49  ;;  %v3577_v50 = vpop.f32.mrb[36].mxu0  ;;  %4502 = vmatprep.mubr.msk.f32.mxu1 %vm4737_vm2, %v4736_v7 }
0x1492   : > { %v4499_v51 = vpop.f32.mrb[37].mxu0  ;;  %v3581_v52 = vsel %vm557_vm4, %v3577_v50, -inf  ;;  %4512 = vmatprep.subr.mxu1 %v4736_v7 }
0x1493   : > { %3582 = vmax.xlane.f32.xlu1 %v3581_v52 }
0x14a4   : > { %3755 = vrot.lane.b32.xlu1 %v5269_v46, %s4779_s14 }
0x1520   : > { %v3583_v45 = vpop.xlane.xlu1 %3582 }
0x1521   : > { %v3584_v53 = vsub.f32 %v3577_v50, %v3583_v45 }
0x1523   : > { %v3585_v55 = vmul.f32 1.442695, %v3584_v53 }
0x1524   : > { %v3756_v57 = vpop.permute.xlu1 %3755 }
0x1525   : > { %4719 = vpow2.f32 %v3585_v55 }
0x152f   : > { %v4720_v56 = vpop.eup %4719 }
0x1530   : > { %4503 = vmatmul.mubr.msk.f32.vlgmr.msra.gmra.mrb[42].mxu1 %vm557_vm4, %v4720_v56  ;;  %v3587_v42 = vsel %vm557_vm4, %v4720_v56, 0.0 }
0x1531   : > { %4513 = vmatpush3.xpose.msk.msra.mxu1 %vm482_vm3, %v3756_v57  ;;  %3588 = vadd.xlane.f32.xlu1 %v3587_v42 }
0x1532   : > { %4514 = vmatprep.mubr.msk.f32.mxu1 %vm4737_vm2, %v4736_v7  ;;  %4614 = vmatprep.subr.bf16.mxu1 %v4741_v54  ;;  %v4156_v54 = vld [vmem:[%s5394_s2 + $0xc8] sm:$0x3f] }
0x1533   : > { %v4611_v63 = vpack.c.bf16 %v4156_v54, %v4155_v62 }
0x1534   : > { %4515 = vmatmul.mubr.msk.f32.vlgmr.msra.gmra.mrb[44].mxu1 %vm482_vm3, %v3754_v58 }
0x1535   : > { %4526 = vmatprep.mubr.msk.f32.mxu1 %vm4737_vm2, %v4736_v7  ;;  %4613 = vmatpush3.bf16.msk.msra.mxu0 %vm4994_vm7, %v4611_v63 }
0x1536   : > { %4517 = vmatprep.subr.mxu0 %v4736_v7 }
0x1563   : > { %v3490_v43 = vpop.f32.mrb[40].mxu1 }
0x1564   : > { %v3494_v60 = vadd.f32 %v3490_v43, %v3414_v59  ;;  %v4494_v61 = vpop.f32.mrb[41].mxu1 }
0x1566   : > { %3495 = vst.msk [vmem:[%s5006_s9] sm:$0xff] %vm229_vm1, %v3494_v60 }
0x156d   : > { %v3669_v14 = vld [vmem:[%s5006_s9] sm:$0xff] }
0x15be   : > { %v3589_v0 = vpop.xlane.xlu1 %3588 }
0x15bf   : > { %4721 = vrcp.f32 %v3589_v0 }
0x15c9   : > { %v4722_v1 = vpop.eup %4721 }
0x1603   : > { %v3664_v2 = vpop.f32.mrb[42].mxu1 }
0x1604   : > { %v3668_v3 = vmul.f32 %v4722_v1, %v3664_v2  ;;  %v4504_v4 = vpop.f32.mrb[43].mxu1 }
0x1606   : > { %4510 = vmatmul.mubr.msk.f32.vlgmr.msra.gmra.mrb[38].mxu0 %vm482_vm3, %v3668_v3 }
0x1607   : > { %v3827_v5 = vpop.f32.mrb[44].mxu1  ;;  %4519 = vmatprep.mubr.msk.f32.mxu0 %vm4737_vm2, %v4736_v7 }
0x1608   : > { %v4516_v8 = vpop.f32.mrb[45].mxu1  ;;  %v3831_v44 = vsel %vm557_vm4, %v3827_v5, -inf }
0x1609   : > { %3832 = vmax.xlane.f32.xlu0 %v3831_v44 }
0x161f   : > { %3842 = vrot.lane.b32.xlu0 %v5269_v46, %s4780_s22  ;;  %v4162_v46 = vld [vmem:[%s5394_s2 + $0xd0] sm:$0xff] }
0x1620   : > { %v4615_v19 = vpack.c.bf16 %v4163_v18, %v4162_v46 }
0x1622   : > { %4617 = vmatpush3.bf16.msk.msra.mxu1 %vm4994_vm7, %v4615_v19 }
0x1696   : > { %v3833_v9 = vpop.xlane.xlu0 %3832 }
0x1697   : > { %v3834_v10 = vsub.f32 %v3827_v5, %v3833_v9 }
0x1699   : > { %v3835_v11 = vmul.f32 1.442695, %v3834_v10 }
0x169a   : > { %v3843_v12 = vpop.permute.xlu0 %3842 }
0x169b   : > { %4723 = vpow2.f32 %v3835_v11  ;;  %4518 = vmatpush3.msra.mxu0 %v3843_v12 }
0x16a5   : > { %v4724_v13 = vpop.eup %4723 }
0x16a6   : > { %4520 = vmatmul.mubr.msk.f32.vlgmr.msra.gmra.mrb[40].mxu0 %vm557_vm4, %v4724_v13  ;;  %v3837_v7 = vsel %vm557_vm4, %v4724_v13, 0.0 }
0x16a7   : > { %3838 = vadd.xlane.f32.xlu1 %v3837_v7 }
0x16d9   : > { %v3745_v15 = vpop.f32.mrb[38].mxu0 }
0x16da   : > { %v3749_v16 = vadd.f32 %v3745_v15, %v3669_v14  ;;  %v4511_v17 = vpop.f32.mrb[39].mxu0 }
0x16dc   : > { %3750 = vst.msk [vmem:[%s5006_s9] sm:$0xff] %vm229_vm1, %v3749_v16 }
0x16e3   : > { %v3919_v25 = vld [vmem:[%s5006_s9] sm:$0xff] }
0x1734   : > { %v3839_v20 = vpop.xlane.xlu1 %3838 }
0x1735   : > { %4725 = vrcp.f32 %v3839_v20 }
0x173f   : > { %v4726_v21 = vpop.eup %4725 }
0x1779   : > { %v3914_v22 = vpop.f32.mrb[40].mxu0 }
0x177a   : > { %v3918_v23 = vmul.f32 %v4726_v21, %v3914_v22  ;;  %v4521_v24 = vpop.f32.mrb[41].mxu0 }
0x177c   : > { %4527 = vmatmul.mubr.msk.f32.vlgmr.msra.gmra.mrb[46].mxu1 %vm482_vm3, %v3918_v23 }
0x184f   : > { %v3995_v26 = vpop.f32.mrb[46].mxu1 }
0x1850   : > { %v3999_v27 = vadd.f32 %v3995_v26, %v3919_v25  ;;  %v4528_v28 = vpop.f32.mrb[47].mxu1 }
0x1852   : > { %4000 = vst.msk [vmem:[%s5006_s9] sm:$0xff] %vm229_vm1, %v3999_v27 }
0x1853 PF: > { %s14_s15 = sadd.s32 1, %s4734_s15  }
0x1854   : > { %p11_p4 = scmp.ge.s32.totalorder %s14_s15, 4  }
0x1856   :  { %13 = sbr.rel (!%p11_p4) target bundleno = 1 (0x1), region = 80 }

</bundles_post_ra>
